<compile_context>
chip_gen: v6e
topology: v6e:2x2x1
jax: 0.10.0
libtpu: 0.0.40
codegen_flags: <defaults>
</compile_context>

<pallas_src>
import functools

import jax
import jax.numpy as jnp
from jax import lax
from jax.experimental import pallas as pl
from jax.experimental.pallas import tpu as pltpu


# ----------------------------------------------------------------------------
# Fused kernel: weight-dropout on W_hh + blocked LSTM recurrence
# ----------------------------------------------------------------------------
def _wd_lstm_kernel(x_ref, wih_ref, whh_ref, u_ref, b_ref, h0_ref, c0_ref,
                    y_ref, h_sc, c_sc, whh_sc, gx_sc, *, keep_thresh, scale):
    """One grid step = TC timesteps of the LSTM.

    x_ref   : (TC, B, E)  time-major input block
    wih_ref : (E, 4H)     input->hidden weight  (gate order i, f, g, o)
    whh_ref : (H, 4H)     RAW hidden->hidden weight
    u_ref   : (H, 4H)     uniform(0,1) draws for the weight-dropout mask
    b_ref   : (1, 4H)     combined bias  b_ih + b_hh
    h0/c0   : (B, H)      initial state
    y_ref   : (TC, B, H)  output hidden-state block
    scratch : h carry, c carry, dropped W_hh (resident), hoisted x projection
    """
    tc, bsz, emb = x_ref.shape
    hidden = h_sc.shape[1]

    @pl.when(pl.program_id(0) == 0)
    def _init():
        h_sc[...] = h0_ref[...]
        c_sc[...] = c0_ref[...]
        # Fused WeightDropout._setweights():
        # keep element iff u >= p  (keep prob = 1 - p), scale kept by 1/(1-p).
        whh_sc[...] = jnp.where(u_ref[...] >= keep_thresh,
                                whh_ref[...] * scale,
                                0.0).astype(whh_sc.dtype)

    # Hoisted input projection for the whole block: one (TC*B, E) @ (E, 4H)
    # matmul (MXU-friendly M = TC*B) instead of TC tiny (B, E) matmuls inside
    # the recurrence; bias folded in here too.
    gx = jnp.dot(x_ref[...].reshape(tc * bsz, emb), wih_ref[...],
                 preferred_element_type=jnp.float32) + b_ref[...]
    gx_sc[...] = gx.reshape(tc, bsz, 4 * hidden)

    def step(i, carry):
        # Only the (B, H) x (H, 4H) recurrent matmul stays in the loop.
        gates = gx_sc[i] + jnp.dot(h_sc[...], whh_sc[...],
                                   preferred_element_type=jnp.float32)
        i_g = jax.nn.sigmoid(gates[:, 0 * hidden:1 * hidden])
        f_g = jax.nn.sigmoid(gates[:, 1 * hidden:2 * hidden])
        g_g = jnp.tanh(gates[:, 2 * hidden:3 * hidden])
        o_g = jax.nn.sigmoid(gates[:, 3 * hidden:4 * hidden])
        c_new = f_g * c_sc[...] + i_g * g_g
        h_new = o_g * jnp.tanh(c_new)
        c_sc[...] = c_new
        h_sc[...] = h_new
        y_ref[i] = h_new.astype(y_ref.dtype)
        return carry

    lax.fori_loop(0, tc, step, 0, unroll=True)


# ----------------------------------------------------------------------------
# WeightDropout(LSTM) forward wrapper
# ----------------------------------------------------------------------------
def weight_dropout_lstm_forward(x_tbe, params, weight_p, dropout_key,
                                h0=None, c0=None, training=True, block_t=8):
    """Equivalent of WeightDropout(nn.LSTM(E, H), weight_p)(x).

    x_tbe: (T, B, E) time-major (nn.LSTM default layout, batch_first=False).
    params: (w_ih (4H,E), w_hh_raw (4H,H), b_ih (4H,), b_hh (4H,)).
    Returns the hidden-state sequence (T, B, H).
    """
    w_ih, w_hh_raw, b_ih, b_hh = params
    T, B, E = x_tbe.shape
    H = w_hh_raw.shape[1]

    # One-time small weight transposes (weights only, never activations).
    w_ih_t = jnp.transpose(w_ih).astype(jnp.float32)      # (E, 4H)
    w_hh_t = jnp.transpose(w_hh_raw).astype(jnp.float32)  # (H, 4H)
    bias = (b_ih + b_hh).reshape(1, 4 * H).astype(jnp.float32)

    if h0 is None:
        h0 = jnp.zeros((B, H), jnp.float32)
    if c0 is None:
        c0 = jnp.zeros((B, H), jnp.float32)

    if training and weight_p > 0.0:
        keep_thresh = float(weight_p)
        scale = 1.0 / (1.0 - float(weight_p))
    else:
        keep_thresh = 0.0          # u >= 0 always -> identity (F.dropout eval)
        scale = 1.0
    # Dropout uniforms generated host-side with jax.random (portable; the
    # hardware PRNG primitives have no interpret/CPU lowering).
    u = jax.random.uniform(dropout_key, (H, 4 * H), jnp.float32)

    # Block multiple timesteps per grid iteration (amortize grid overhead).
    tc = min(T, block_t)
    while T % tc:
        tc -= 1

    # TODO(synk): for large H cast x/W_ih/W_hh to bfloat16 (keep f32 acc) and
    # set pltpu.CompilerParams(vmem_limit_bytes=...) so resident weights fit
    # v7x's 64 MiB / v5e's 16 MiB default scoped VMEM.
    grid_spec = pltpu.PrefetchScalarGridSpec(
        num_scalar_prefetch=0,
        grid=(T // tc,),
        in_specs=[
            pl.BlockSpec((tc, B, E), lambda t: (t, 0, 0)),      # x block
            pl.BlockSpec((E, 4 * H), lambda t: (0, 0)),          # W_ih (resident)
            pl.BlockSpec((H, 4 * H), lambda t: (0, 0)),          # raw W_hh
            pl.BlockSpec((H, 4 * H), lambda t: (0, 0)),          # dropout uniforms
            pl.BlockSpec((1, 4 * H), lambda t: (0, 0)),          # bias
            pl.BlockSpec((B, H), lambda t: (0, 0)),              # h0
            pl.BlockSpec((B, H), lambda t: (0, 0)),              # c0
        ],
        out_specs=pl.BlockSpec((tc, B, H), lambda t: (t, 0, 0)),
        scratch_shapes=[
            pltpu.VMEM((B, H), jnp.float32),           # h carry
            pltpu.VMEM((B, H), jnp.float32),           # c carry
            pltpu.VMEM((H, 4 * H), jnp.float32),       # dropped W_hh (resident)
            pltpu.VMEM((tc, B, 4 * H), jnp.float32),   # hoisted x projection
        ],
    )
    return pl.pallas_call(
        functools.partial(_wd_lstm_kernel, keep_thresh=keep_thresh, scale=scale),
        out_shape=jax.ShapeDtypeStruct((T, B, H), jnp.float32),
        grid_spec=grid_spec,
        compiler_params=pltpu.CompilerParams(
            dimension_semantics=("arbitrary",)),       # sequential recurrence
    )(x_tbe.astype(jnp.float32), w_ih_t, w_hh_t, u, bias, h0, c0)


# ----------------------------------------------------------------------------
# Pure-JAX reference (same dropout draws) for an in-script sanity check
# ----------------------------------------------------------------------------
def _lstm_reference(x_tbe, w_ih_t, w_hh_drop_t, bias, h0, c0):
    H = h0.shape[-1]

    def step(carry, x_t):
        h, c = carry
        gates = x_t @ w_ih_t + h @ w_hh_drop_t + bias
        i_g = jax.nn.sigmoid(gates[:, 0 * H:1 * H])
        f_g = jax.nn.sigmoid(gates[:, 1 * H:2 * H])
        g_g = jnp.tanh(gates[:, 2 * H:3 * H])
        o_g = jax.nn.sigmoid(gates[:, 3 * H:4 * H])
        c = f_g * c + i_g * g_g
        h = o_g * jnp.tanh(c)
        return (h, c), h

    _, ys = lax.scan(step, (h0, c0), x_tbe)
    return ys


if __name__ == "__main__":
    T, B, E, H = 16, 8, 32, 32
    weight_p = 0.5

    key = jax.random.PRNGKey(0)
    k_x, k_wih, k_whh, k_bih, k_bhh, k_drop = jax.random.split(key, 6)
    x = jax.random.normal(k_x, (T, B, E), dtype=jnp.float32)  # (T, B, E): LSTM default
    s = 1.0 / jnp.sqrt(H)
    w_ih = jax.random.uniform(k_wih, (4 * H, E), jnp.float32, -s, s)
    w_hh_raw = jax.random.uniform(k_whh, (4 * H, H), jnp.float32, -s, s)
    b_ih = jax.random.uniform(k_bih, (4 * H,), jnp.float32, -s, s)
    b_hh = jax.random.uniform(k_bhh, (4 * H,), jnp.float32, -s, s)

    out = weight_dropout_lstm_forward(
        x, (w_ih, w_hh_raw, b_ih, b_hh), weight_p, k_drop, training=True)
    out = jax.block_until_ready(out)
    assert out.shape == (T, B, H) and out.dtype == jnp.float32

    # Sanity check against a pure-JAX LSTM using the identical dropout mask.
    u = jax.random.uniform(k_drop, (H, 4 * H), jnp.float32)
    w_hh_drop_t = jnp.where(u >= weight_p, w_hh_raw.T / (1.0 - weight_p), 0.0)
    ref = _lstm_reference(x, w_ih.T, w_hh_drop_t, (b_ih + b_hh)[None, :],
                          jnp.zeros((B, H), jnp.float32),
                          jnp.zeros((B, H), jnp.float32))
    assert jnp.allclose(out, ref, atol=1e-3, rtol=1e-3)

    print("KERNEL_OK")
</pallas_src>

<mosaic_0001>
module attributes {stable_mosaic.version = 11 : i64} {
  func.func @_wd_lstm_kernel(%arg0: i32, %arg1: memref<8x8x32xf32, #tpu.memory_space<vmem>>, %arg2: memref<32x128xf32, #tpu.memory_space<vmem>>, %arg3: memref<32x128xf32, #tpu.memory_space<vmem>>, %arg4: memref<32x128xf32, #tpu.memory_space<vmem>>, %arg5: memref<1x128xf32, #tpu.memory_space<vmem>>, %arg6: memref<8x32xf32, #tpu.memory_space<vmem>>, %arg7: memref<8x32xf32, #tpu.memory_space<vmem>>, %arg8: memref<8x8x32xf32, #tpu.memory_space<vmem>>, %arg9: memref<8x32xf32, #tpu.memory_space<vmem>>, %arg10: memref<8x32xf32, #tpu.memory_space<vmem>>, %arg11: memref<32x128xf32, #tpu.memory_space<vmem>>, %arg12: memref<8x8x128xf32, #tpu.memory_space<vmem>>) attributes {dimension_semantics = [#tpu.dimension_semantics<arbitrary>], iteration_bounds = array<i64: 2>, scalar_prefetch = 0 : i64, scratch_operands = 4 : i64, tpu.core_type = #tpu.core_type<tc>, window_params = [{transform_indices = @transform_0, window_bounds = array<i64: 8, 8, 32>}, {pipeline_mode = #tpu.pipeline_mode<synchronous>, transform_indices = @transform_1, window_bounds = array<i64: 32, 128>}, {pipeline_mode = #tpu.pipeline_mode<synchronous>, transform_indices = @transform_2, window_bounds = array<i64: 32, 128>}, {pipeline_mode = #tpu.pipeline_mode<synchronous>, transform_indices = @transform_3, window_bounds = array<i64: 32, 128>}, {pipeline_mode = #tpu.pipeline_mode<synchronous>, transform_indices = @transform_4, window_bounds = array<i64: 1, 128>}, {pipeline_mode = #tpu.pipeline_mode<synchronous>, transform_indices = @transform_5, window_bounds = array<i64: 8, 32>}, {pipeline_mode = #tpu.pipeline_mode<synchronous>, transform_indices = @transform_6, window_bounds = array<i64: 8, 32>}, {transform_indices = @transform_7, window_bounds = array<i64: 8, 8, 32>}]} {
    %c0_i32 = arith.constant 0 : i32
    %0 = arith.cmpi eq, %arg0, %c0_i32 : i32
    %1 = arith.extui %0 : i1 to i32
    %c0_i32_0 = arith.constant 0 : i32
    %2 = arith.cmpi ne, %1, %c0_i32_0 : i32
    scf.if %2 {
      %c0_155 = arith.constant 0 : index
      %c0_156 = arith.constant 0 : index
      %324 = vector.load %arg6[%c0_155, %c0_156] : memref<8x32xf32, #tpu.memory_space<vmem>>, vector<8x32xf32>
      %c0_157 = arith.constant 0 : index
      %c0_158 = arith.constant 0 : index
      %325 = vector.load %arg9[%c0_157, %c0_158] : memref<8x32xf32, #tpu.memory_space<vmem>>, vector<8x32xf32>
      tpu.vector_store %arg9[%c0_157, %c0_158], %324 {strides = array<i32>} : memref<8x32xf32, #tpu.memory_space<vmem>>, vector<8x32xf32>,
      %c0_159 = arith.constant 0 : index
      %c0_160 = arith.constant 0 : index
      %326 = vector.load %arg7[%c0_159, %c0_160] : memref<8x32xf32, #tpu.memory_space<vmem>>, vector<8x32xf32>
      %c0_161 = arith.constant 0 : index
      %c0_162 = arith.constant 0 : index
      %327 = vector.load %arg10[%c0_161, %c0_162] : memref<8x32xf32, #tpu.memory_space<vmem>>, vector<8x32xf32>
      tpu.vector_store %arg10[%c0_161, %c0_162], %326 {strides = array<i32>} : memref<8x32xf32, #tpu.memory_space<vmem>>, vector<8x32xf32>,
      %c0_163 = arith.constant 0 : index
      %c0_164 = arith.constant 0 : index
      %328 = vector.load %arg4[%c0_163, %c0_164] : memref<32x128xf32, #tpu.memory_space<vmem>>, vector<32x128xf32>
      %cst_165 = arith.constant 5.000000e-01 : f32
      %329 = vector.broadcast %cst_165 : f32 to vector<32x128xf32>
      %330 = arith.cmpf oge, %328, %329 : vector<32x128xf32>
      %c0_166 = arith.constant 0 : index
      %c0_167 = arith.constant 0 : index
      %331 = vector.load %arg3[%c0_166, %c0_167] : memref<32x128xf32, #tpu.memory_space<vmem>>, vector<32x128xf32>
      %cst_168 = arith.constant 2.000000e+00 : f32
      %332 = vector.broadcast %cst_168 : f32 to vector<32x128xf32>
      %333 = arith.mulf %331, %332 : vector<32x128xf32>
      %cst_169 = arith.constant 0.000000e+00 : f32
      %334 = vector.broadcast %cst_169 : f32 to vector<32x128xf32>
      %335 = arith.select %330, %333, %334 : vector<32x128xi1>, vector<32x128xf32>
      %c0_170 = arith.constant 0 : index
      %c0_171 = arith.constant 0 : index
      %336 = vector.load %arg11[%c0_170, %c0_171] : memref<32x128xf32, #tpu.memory_space<vmem>>, vector<32x128xf32>
      tpu.vector_store %arg11[%c0_170, %c0_171], %335 {strides = array<i32>} : memref<32x128xf32, #tpu.memory_space<vmem>>, vector<32x128xf32>,
    } else {
    }
    %c0 = arith.constant 0 : index
    %c0_1 = arith.constant 0 : index
    %c0_2 = arith.constant 0 : index
    %3 = vector.load %arg1[%c0, %c0_1, %c0_2] : memref<8x8x32xf32, #tpu.memory_space<vmem>>, vector<8x8x32xf32>
    %4 = vector.shape_cast %3 : vector<8x8x32xf32> to vector<64x32xf32>
    %c0_3 = arith.constant 0 : index
    %c0_4 = arith.constant 0 : index
    %5 = vector.load %arg2[%c0_3, %c0_4] : memref<32x128xf32, #tpu.memory_space<vmem>>, vector<32x128xf32>
    %cst = arith.constant dense<0.000000e+00> : vector<64x128xf32>
    %6 = tpu.matmul %4, %5, %cst {dimension_numbers = #tpu.dot_dimension_numbers<[1], [0], [0], [1], [0, 0, 1, 1], [], []>} : vector<64x32xf32>, vector<32x128xf32>, vector<64x128xf32> -> vector<64x128xf32>
    %c0_5 = arith.constant 0 : index
    %c0_6 = arith.constant 0 : index
    %7 = vector.load %arg5[%c0_5, %c0_6] : memref<1x128xf32, #tpu.memory_space<vmem>>, vector<1x128xf32>
    %8 = vector.broadcast %7 : vector<1x128xf32> to vector<64x128xf32>
    %9 = arith.addf %6, %8 : vector<64x128xf32>
    %10 = vector.shape_cast %9 : vector<64x128xf32> to vector<8x8x128xf32>
    %c0_7 = arith.constant 0 : index
    %c0_8 = arith.constant 0 : index
    %c0_9 = arith.constant 0 : index
    %11 = vector.load %arg12[%c0_7, %c0_8, %c0_9] : memref<8x8x128xf32, #tpu.memory_space<vmem>>, vector<8x8x128xf32>
    tpu.vector_store %arg12[%c0_7, %c0_8, %c0_9], %10 {strides = array<i32>} : memref<8x8x128xf32, #tpu.memory_space<vmem>>, vector<8x8x128xf32>,
    %c0_i32_10 = arith.constant 0 : i32
    %12 = arith.index_cast %c0_i32_10 : i32 to index
    %c0_11 = arith.constant 0 : index
    %c0_12 = arith.constant 0 : index
    %13 = vector.load %arg12[%12, %c0_11, %c0_12] : memref<8x8x128xf32, #tpu.memory_space<vmem>>, vector<1x8x128xf32>
    %14 = vector.shape_cast %13 : vector<1x8x128xf32> to vector<8x128xf32>
    %c0_13 = arith.constant 0 : index
    %c0_14 = arith.constant 0 : index
    %15 = vector.load %arg9[%c0_13, %c0_14] : memref<8x32xf32, #tpu.memory_space<vmem>>, vector<8x32xf32>
    %c0_15 = arith.constant 0 : index
    %c0_16 = arith.constant 0 : index
    %16 = vector.load %arg11[%c0_15, %c0_16] : memref<32x128xf32, #tpu.memory_space<vmem>>, vector<32x128xf32>
    %cst_17 = arith.constant dense<0.000000e+00> : vector<8x128xf32>
    %17 = tpu.matmul %15, %16, %cst_17 {dimension_numbers = #tpu.dot_dimension_numbers<[1], [0], [0], [1], [0, 0, 1, 1], [], []>} : vector<8x32xf32>, vector<32x128xf32>, vector<8x128xf32> -> vector<8x128xf32>
    %18 = arith.addf %14, %17 : vector<8x128xf32>
    %19 = vector.extract_strided_slice %18 {offsets = [0, 0], sizes = [8, 32], strides = [1, 1]} : vector<8x128xf32> to vector<8x32xf32>
    %20 = arith.negf %19 : vector<8x32xf32>
    %21 = math.exp %20 : vector<8x32xf32>
    %cst_18 = arith.constant 1.000000e+00 : f32
    %22 = vector.broadcast %cst_18 : f32 to vector<8x32xf32>
    %23 = arith.addf %22, %21 : vector<8x32xf32>
    %24 = arith.divf %22, %23 : vector<8x32xf32>
    %25 = vector.extract_strided_slice %18 {offsets = [0, 32], sizes = [8, 32], strides = [1, 1]} : vector<8x128xf32> to vector<8x32xf32>
    %26 = arith.negf %25 : vector<8x32xf32>
    %27 = math.exp %26 : vector<8x32xf32>
    %cst_19 = arith.constant 1.000000e+00 : f32
    %28 = vector.broadcast %cst_19 : f32 to vector<8x32xf32>
    %29 = arith.addf %28, %27 : vector<8x32xf32>
    %30 = arith.divf %28, %29 : vector<8x32xf32>
    %31 = vector.extract_strided_slice %18 {offsets = [0, 64], sizes = [8, 32], strides = [1, 1]} : vector<8x128xf32> to vector<8x32xf32>
    %32 = math.tanh %31 : vector<8x32xf32>
    %33 = vector.extract_strided_slice %18 {offsets = [0, 96], sizes = [8, 32], strides = [1, 1]} : vector<8x128xf32> to vector<8x32xf32>
    %34 = arith.negf %33 : vector<8x32xf32>
    %35 = math.exp %34 : vector<8x32xf32>
    %cst_20 = arith.constant 1.000000e+00 : f32
    %36 = vector.broadcast %cst_20 : f32 to vector<8x32xf32>
    %37 = arith.addf %36, %35 : vector<8x32xf32>
    %38 = arith.divf %36, %37 : vector<8x32xf32>
    %c0_21 = arith.constant 0 : index
    %c0_22 = arith.constant 0 : index
    %39 = vector.load %arg10[%c0_21, %c0_22] : memref<8x32xf32, #tpu.memory_space<vmem>>, vector<8x32xf32>
    %40 = arith.mulf %30, %39 : vector<8x32xf32>
    %41 = arith.mulf %24, %32 : vector<8x32xf32>
    %42 = arith.addf %40, %41 : vector<8x32xf32>
    %43 = math.tanh %42 : vector<8x32xf32>
    %44 = arith.mulf %38, %43 : vector<8x32xf32>
    %c0_23 = arith.constant 0 : index
    %c0_24 = arith.constant 0 : index
    %45 = vector.load %arg10[%c0_23, %c0_24] : memref<8x32xf32, #tpu.memory_space<vmem>>, vector<8x32xf32>
    tpu.vector_store %arg10[%c0_23, %c0_24], %42 {strides = array<i32>} : memref<8x32xf32, #tpu.memory_space<vmem>>, vector<8x32xf32>,
    %c0_25 = arith.constant 0 : index
    %c0_26 = arith.constant 0 : index
    %46 = vector.load %arg9[%c0_25, %c0_26] : memref<8x32xf32, #tpu.memory_space<vmem>>, vector<8x32xf32>
    tpu.vector_store %arg9[%c0_25, %c0_26], %44 {strides = array<i32>} : memref<8x32xf32, #tpu.memory_space<vmem>>, vector<8x32xf32>,
    %47 = arith.index_cast %c0_i32_10 : i32 to index
    %c0_27 = arith.constant 0 : index
    %c0_28 = arith.constant 0 : index
    %48 = vector.load %arg8[%47, %c0_27, %c0_28] : memref<8x8x32xf32, #tpu.memory_space<vmem>>, vector<1x8x32xf32>
    %49 = vector.shape_cast %48 : vector<1x8x32xf32> to vector<8x32xf32>
    %50 = vector.shape_cast %44 : vector<8x32xf32> to vector<1x8x32xf32>
    tpu.vector_store %arg8[%47, %c0_27, %c0_28], %50 {strides = array<i32>} : memref<8x8x32xf32, #tpu.memory_space<vmem>>, vector<1x8x32xf32>,
    %c1_i32 = arith.constant 1 : i32
    %51 = arith.index_cast %c1_i32 : i32 to index
    %c0_29 = arith.constant 0 : index
    %c0_30 = arith.constant 0 : index
    %52 = vector.load %arg12[%51, %c0_29, %c0_30] : memref<8x8x128xf32, #tpu.memory_space<vmem>>, vector<1x8x128xf32>
    %53 = vector.shape_cast %52 : vector<1x8x128xf32> to vector<8x128xf32>
    %c0_31 = arith.constant 0 : index
    %c0_32 = arith.constant 0 : index
    %54 = vector.load %arg9[%c0_31, %c0_32] : memref<8x32xf32, #tpu.memory_space<vmem>>, vector<8x32xf32>
    %c0_33 = arith.constant 0 : index
    %c0_34 = arith.constant 0 : index
    %55 = vector.load %arg11[%c0_33, %c0_34] : memref<32x128xf32, #tpu.memory_space<vmem>>, vector<32x128xf32>
    %cst_35 = arith.constant dense<0.000000e+00> : vector<8x128xf32>
    %56 = tpu.matmul %54, %55, %cst_35 {dimension_numbers = #tpu.dot_dimension_numbers<[1], [0], [0], [1], [0, 0, 1, 1], [], []>} : vector<8x32xf32>, vector<32x128xf32>, vector<8x128xf32> -> vector<8x128xf32>
    %57 = arith.addf %53, %56 : vector<8x128xf32>
    %58 = vector.extract_strided_slice %57 {offsets = [0, 0], sizes = [8, 32], strides = [1, 1]} : vector<8x128xf32> to vector<8x32xf32>
    %59 = arith.negf %58 : vector<8x32xf32>
    %60 = math.exp %59 : vector<8x32xf32>
    %cst_36 = arith.constant 1.000000e+00 : f32
    %61 = vector.broadcast %cst_36 : f32 to vector<8x32xf32>
    %62 = arith.addf %61, %60 : vector<8x32xf32>
    %63 = arith.divf %61, %62 : vector<8x32xf32>
    %64 = vector.extract_strided_slice %57 {offsets = [0, 32], sizes = [8, 32], strides = [1, 1]} : vector<8x128xf32> to vector<8x32xf32>
    %65 = arith.negf %64 : vector<8x32xf32>
    %66 = math.exp %65 : vector<8x32xf32>
    %cst_37 = arith.constant 1.000000e+00 : f32
    %67 = vector.broadcast %cst_37 : f32 to vector<8x32xf32>
    %68 = arith.addf %67, %66 : vector<8x32xf32>
    %69 = arith.divf %67, %68 : vector<8x32xf32>
    %70 = vector.extract_strided_slice %57 {offsets = [0, 64], sizes = [8, 32], strides = [1, 1]} : vector<8x128xf32> to vector<8x32xf32>
    %71 = math.tanh %70 : vector<8x32xf32>
    %72 = vector.extract_strided_slice %57 {offsets = [0, 96], sizes = [8, 32], strides = [1, 1]} : vector<8x128xf32> to vector<8x32xf32>
    %73 = arith.negf %72 : vector<8x32xf32>
    %74 = math.exp %73 : vector<8x32xf32>
    %cst_38 = arith.constant 1.000000e+00 : f32
    %75 = vector.broadcast %cst_38 : f32 to vector<8x32xf32>
    %76 = arith.addf %75, %74 : vector<8x32xf32>
    %77 = arith.divf %75, %76 : vector<8x32xf32>
    %c0_39 = arith.constant 0 : index
    %c0_40 = arith.constant 0 : index
    %78 = vector.load %arg10[%c0_39, %c0_40] : memref<8x32xf32, #tpu.memory_space<vmem>>, vector<8x32xf32>
    %79 = arith.mulf %69, %78 : vector<8x32xf32>
    %80 = arith.mulf %63, %71 : vector<8x32xf32>
    %81 = arith.addf %79, %80 : vector<8x32xf32>
    %82 = math.tanh %81 : vector<8x32xf32>
    %83 = arith.mulf %77, %82 : vector<8x32xf32>
    %c0_41 = arith.constant 0 : index
    %c0_42 = arith.constant 0 : index
    %84 = vector.load %arg10[%c0_41, %c0_42] : memref<8x32xf32, #tpu.memory_space<vmem>>, vector<8x32xf32>
    tpu.vector_store %arg10[%c0_41, %c0_42], %81 {strides = array<i32>} : memref<8x32xf32, #tpu.memory_space<vmem>>, vector<8x32xf32>,
    %c0_43 = arith.constant 0 : index
    %c0_44 = arith.constant 0 : index
    %85 = vector.load %arg9[%c0_43, %c0_44] : memref<8x32xf32, #tpu.memory_space<vmem>>, vector<8x32xf32>
    tpu.vector_store %arg9[%c0_43, %c0_44], %83 {strides = array<i32>} : memref<8x32xf32, #tpu.memory_space<vmem>>, vector<8x32xf32>,
    %86 = arith.index_cast %c1_i32 : i32 to index
    %c0_45 = arith.constant 0 : index
    %c0_46 = arith.constant 0 : index
    %87 = vector.load %arg8[%86, %c0_45, %c0_46] : memref<8x8x32xf32, #tpu.memory_space<vmem>>, vector<1x8x32xf32>
    %88 = vector.shape_cast %87 : vector<1x8x32xf32> to vector<8x32xf32>
    %89 = vector.shape_cast %83 : vector<8x32xf32> to vector<1x8x32xf32>
    tpu.vector_store %arg8[%86, %c0_45, %c0_46], %89 {strides = array<i32>} : memref<8x8x32xf32, #tpu.memory_space<vmem>>, vector<1x8x32xf32>,
    %c2_i32 = arith.constant 2 : i32
    %90 = arith.index_cast %c2_i32 : i32 to index
    %c0_47 = arith.constant 0 : index
    %c0_48 = arith.constant 0 : index
    %91 = vector.load %arg12[%90, %c0_47, %c0_48] : memref<8x8x128xf32, #tpu.memory_space<vmem>>, vector<1x8x128xf32>
    %92 = vector.shape_cast %91 : vector<1x8x128xf32> to vector<8x128xf32>
    %c0_49 = arith.constant 0 : index
    %c0_50 = arith.constant 0 : index
    %93 = vector.load %arg9[%c0_49, %c0_50] : memref<8x32xf32, #tpu.memory_space<vmem>>, vector<8x32xf32>
    %c0_51 = arith.constant 0 : index
    %c0_52 = arith.constant 0 : index
    %94 = vector.load %arg11[%c0_51, %c0_52] : memref<32x128xf32, #tpu.memory_space<vmem>>, vector<32x128xf32>
    %cst_53 = arith.constant dense<0.000000e+00> : vector<8x128xf32>
    %95 = tpu.matmul %93, %94, %cst_53 {dimension_numbers = #tpu.dot_dimension_numbers<[1], [0], [0], [1], [0, 0, 1, 1], [], []>} : vector<8x32xf32>, vector<32x128xf32>, vector<8x128xf32> -> vector<8x128xf32>
    %96 = arith.addf %92, %95 : vector<8x128xf32>
    %97 = vector.extract_strided_slice %96 {offsets = [0, 0], sizes = [8, 32], strides = [1, 1]} : vector<8x128xf32> to vector<8x32xf32>
    %98 = arith.negf %97 : vector<8x32xf32>
    %99 = math.exp %98 : vector<8x32xf32>
    %cst_54 = arith.constant 1.000000e+00 : f32
    %100 = vector.broadcast %cst_54 : f32 to vector<8x32xf32>
    %101 = arith.addf %100, %99 : vector<8x32xf32>
    %102 = arith.divf %100, %101 : vector<8x32xf32>
    %103 = vector.extract_strided_slice %96 {offsets = [0, 32], sizes = [8, 32], strides = [1, 1]} : vector<8x128xf32> to vector<8x32xf32>
    %104 = arith.negf %103 : vector<8x32xf32>
    %105 = math.exp %104 : vector<8x32xf32>
    %cst_55 = arith.constant 1.000000e+00 : f32
    %106 = vector.broadcast %cst_55 : f32 to vector<8x32xf32>
    %107 = arith.addf %106, %105 : vector<8x32xf32>
    %108 = arith.divf %106, %107 : vector<8x32xf32>
    %109 = vector.extract_strided_slice %96 {offsets = [0, 64], sizes = [8, 32], strides = [1, 1]} : vector<8x128xf32> to vector<8x32xf32>
    %110 = math.tanh %109 : vector<8x32xf32>
    %111 = vector.extract_strided_slice %96 {offsets = [0, 96], sizes = [8, 32], strides = [1, 1]} : vector<8x128xf32> to vector<8x32xf32>
    %112 = arith.negf %111 : vector<8x32xf32>
    %113 = math.exp %112 : vector<8x32xf32>
    %cst_56 = arith.constant 1.000000e+00 : f32
    %114 = vector.broadcast %cst_56 : f32 to vector<8x32xf32>
    %115 = arith.addf %114, %113 : vector<8x32xf32>
    %116 = arith.divf %114, %115 : vector<8x32xf32>
    %c0_57 = arith.constant 0 : index
    %c0_58 = arith.constant 0 : index
    %117 = vector.load %arg10[%c0_57, %c0_58] : memref<8x32xf32, #tpu.memory_space<vmem>>, vector<8x32xf32>
    %118 = arith.mulf %108, %117 : vector<8x32xf32>
    %119 = arith.mulf %102, %110 : vector<8x32xf32>
    %120 = arith.addf %118, %119 : vector<8x32xf32>
    %121 = math.tanh %120 : vector<8x32xf32>
    %122 = arith.mulf %116, %121 : vector<8x32xf32>
    %c0_59 = arith.constant 0 : index
    %c0_60 = arith.constant 0 : index
    %123 = vector.load %arg10[%c0_59, %c0_60] : memref<8x32xf32, #tpu.memory_space<vmem>>, vector<8x32xf32>
    tpu.vector_store %arg10[%c0_59, %c0_60], %120 {strides = array<i32>} : memref<8x32xf32, #tpu.memory_space<vmem>>, vector<8x32xf32>,
    %c0_61 = arith.constant 0 : index
    %c0_62 = arith.constant 0 : index
    %124 = vector.load %arg9[%c0_61, %c0_62] : memref<8x32xf32, #tpu.memory_space<vmem>>, vector<8x32xf32>
    tpu.vector_store %arg9[%c0_61, %c0_62], %122 {strides = array<i32>} : memref<8x32xf32, #tpu.memory_space<vmem>>, vector<8x32xf32>,
    %125 = arith.index_cast %c2_i32 : i32 to index
    %c0_63 = arith.constant 0 : index
    %c0_64 = arith.constant 0 : index
    %126 = vector.load %arg8[%125, %c0_63, %c0_64] : memref<8x8x32xf32, #tpu.memory_space<vmem>>, vector<1x8x32xf32>
    %127 = vector.shape_cast %126 : vector<1x8x32xf32> to vector<8x32xf32>
    %128 = vector.shape_cast %122 : vector<8x32xf32> to vector<1x8x32xf32>
    tpu.vector_store %arg8[%125, %c0_63, %c0_64], %128 {strides = array<i32>} : memref<8x8x32xf32, #tpu.memory_space<vmem>>, vector<1x8x32xf32>,
    %c3_i32 = arith.constant 3 : i32
    %129 = arith.index_cast %c3_i32 : i32 to index
    %c0_65 = arith.constant 0 : index
    %c0_66 = arith.constant 0 : index
    %130 = vector.load %arg12[%129, %c0_65, %c0_66] : memref<8x8x128xf32, #tpu.memory_space<vmem>>, vector<1x8x128xf32>
    %131 = vector.shape_cast %130 : vector<1x8x128xf32> to vector<8x128xf32>
    %c0_67 = arith.constant 0 : index
    %c0_68 = arith.constant 0 : index
    %132 = vector.load %arg9[%c0_67, %c0_68] : memref<8x32xf32, #tpu.memory_space<vmem>>, vector<8x32xf32>
    %c0_69 = arith.constant 0 : index
    %c0_70 = arith.constant 0 : index
    %133 = vector.load %arg11[%c0_69, %c0_70] : memref<32x128xf32, #tpu.memory_space<vmem>>, vector<32x128xf32>
    %cst_71 = arith.constant dense<0.000000e+00> : vector<8x128xf32>
    %134 = tpu.matmul %132, %133, %cst_71 {dimension_numbers = #tpu.dot_dimension_numbers<[1], [0], [0], [1], [0, 0, 1, 1], [], []>} : vector<8x32xf32>, vector<32x128xf32>, vector<8x128xf32> -> vector<8x128xf32>
    %135 = arith.addf %131, %134 : vector<8x128xf32>
    %136 = vector.extract_strided_slice %135 {offsets = [0, 0], sizes = [8, 32], strides = [1, 1]} : vector<8x128xf32> to vector<8x32xf32>
    %137 = arith.negf %136 : vector<8x32xf32>
    %138 = math.exp %137 : vector<8x32xf32>
    %cst_72 = arith.constant 1.000000e+00 : f32
    %139 = vector.broadcast %cst_72 : f32 to vector<8x32xf32>
    %140 = arith.addf %139, %138 : vector<8x32xf32>
    %141 = arith.divf %139, %140 : vector<8x32xf32>
    %142 = vector.extract_strided_slice %135 {offsets = [0, 32], sizes = [8, 32], strides = [1, 1]} : vector<8x128xf32> to vector<8x32xf32>
    %143 = arith.negf %142 : vector<8x32xf32>
    %144 = math.exp %143 : vector<8x32xf32>
    %cst_73 = arith.constant 1.000000e+00 : f32
    %145 = vector.broadcast %cst_73 : f32 to vector<8x32xf32>
    %146 = arith.addf %145, %144 : vector<8x32xf32>
    %147 = arith.divf %145, %146 : vector<8x32xf32>
    %148 = vector.extract_strided_slice %135 {offsets = [0, 64], sizes = [8, 32], strides = [1, 1]} : vector<8x128xf32> to vector<8x32xf32>
    %149 = math.tanh %148 : vector<8x32xf32>
    %150 = vector.extract_strided_slice %135 {offsets = [0, 96], sizes = [8, 32], strides = [1, 1]} : vector<8x128xf32> to vector<8x32xf32>
    %151 = arith.negf %150 : vector<8x32xf32>
    %152 = math.exp %151 : vector<8x32xf32>
    %cst_74 = arith.constant 1.000000e+00 : f32
    %153 = vector.broadcast %cst_74 : f32 to vector<8x32xf32>
    %154 = arith.addf %153, %152 : vector<8x32xf32>
    %155 = arith.divf %153, %154 : vector<8x32xf32>
    %c0_75 = arith.constant 0 : index
    %c0_76 = arith.constant 0 : index
    %156 = vector.load %arg10[%c0_75, %c0_76] : memref<8x32xf32, #tpu.memory_space<vmem>>, vector<8x32xf32>
    %157 = arith.mulf %147, %156 : vector<8x32xf32>
    %158 = arith.mulf %141, %149 : vector<8x32xf32>
    %159 = arith.addf %157, %158 : vector<8x32xf32>
    %160 = math.tanh %159 : vector<8x32xf32>
    %161 = arith.mulf %155, %160 : vector<8x32xf32>
    %c0_77 = arith.constant 0 : index
    %c0_78 = arith.constant 0 : index
    %162 = vector.load %arg10[%c0_77, %c0_78] : memref<8x32xf32, #tpu.memory_space<vmem>>, vector<8x32xf32>
    tpu.vector_store %arg10[%c0_77, %c0_78], %159 {strides = array<i32>} : memref<8x32xf32, #tpu.memory_space<vmem>>, vector<8x32xf32>,
    %c0_79 = arith.constant 0 : index
    %c0_80 = arith.constant 0 : index
    %163 = vector.load %arg9[%c0_79, %c0_80] : memref<8x32xf32, #tpu.memory_space<vmem>>, vector<8x32xf32>
    tpu.vector_store %arg9[%c0_79, %c0_80], %161 {strides = array<i32>} : memref<8x32xf32, #tpu.memory_space<vmem>>, vector<8x32xf32>,
    %164 = arith.index_cast %c3_i32 : i32 to index
    %c0_81 = arith.constant 0 : index
    %c0_82 = arith.constant 0 : index
    %165 = vector.load %arg8[%164, %c0_81, %c0_82] : memref<8x8x32xf32, #tpu.memory_space<vmem>>, vector<1x8x32xf32>
    %166 = vector.shape_cast %165 : vector<1x8x32xf32> to vector<8x32xf32>
    %167 = vector.shape_cast %161 : vector<8x32xf32> to vector<1x8x32xf32>
    tpu.vector_store %arg8[%164, %c0_81, %c0_82], %167 {strides = array<i32>} : memref<8x8x32xf32, #tpu.memory_space<vmem>>, vector<1x8x32xf32>,
    %c4_i32 = arith.constant 4 : i32
    %168 = arith.index_cast %c4_i32 : i32 to index
    %c0_83 = arith.constant 0 : index
    %c0_84 = arith.constant 0 : index
    %169 = vector.load %arg12[%168, %c0_83, %c0_84] : memref<8x8x128xf32, #tpu.memory_space<vmem>>, vector<1x8x128xf32>
    %170 = vector.shape_cast %169 : vector<1x8x128xf32> to vector<8x128xf32>
    %c0_85 = arith.constant 0 : index
    %c0_86 = arith.constant 0 : index
    %171 = vector.load %arg9[%c0_85, %c0_86] : memref<8x32xf32, #tpu.memory_space<vmem>>, vector<8x32xf32>
    %c0_87 = arith.constant 0 : index
    %c0_88 = arith.constant 0 : index
    %172 = vector.load %arg11[%c0_87, %c0_88] : memref<32x128xf32, #tpu.memory_space<vmem>>, vector<32x128xf32>
    %cst_89 = arith.constant dense<0.000000e+00> : vector<8x128xf32>
    %173 = tpu.matmul %171, %172, %cst_89 {dimension_numbers = #tpu.dot_dimension_numbers<[1], [0], [0], [1], [0, 0, 1, 1], [], []>} : vector<8x32xf32>, vector<32x128xf32>, vector<8x128xf32> -> vector<8x128xf32>
    %174 = arith.addf %170, %173 : vector<8x128xf32>
    %175 = vector.extract_strided_slice %174 {offsets = [0, 0], sizes = [8, 32], strides = [1, 1]} : vector<8x128xf32> to vector<8x32xf32>
    %176 = arith.negf %175 : vector<8x32xf32>
    %177 = math.exp %176 : vector<8x32xf32>
    %cst_90 = arith.constant 1.000000e+00 : f32
    %178 = vector.broadcast %cst_90 : f32 to vector<8x32xf32>
    %179 = arith.addf %178, %177 : vector<8x32xf32>
    %180 = arith.divf %178, %179 : vector<8x32xf32>
    %181 = vector.extract_strided_slice %174 {offsets = [0, 32], sizes = [8, 32], strides = [1, 1]} : vector<8x128xf32> to vector<8x32xf32>
    %182 = arith.negf %181 : vector<8x32xf32>
    %183 = math.exp %182 : vector<8x32xf32>
    %cst_91 = arith.constant 1.000000e+00 : f32
    %184 = vector.broadcast %cst_91 : f32 to vector<8x32xf32>
    %185 = arith.addf %184, %183 : vector<8x32xf32>
    %186 = arith.divf %184, %185 : vector<8x32xf32>
    %187 = vector.extract_strided_slice %174 {offsets = [0, 64], sizes = [8, 32], strides = [1, 1]} : vector<8x128xf32> to vector<8x32xf32>
    %188 = math.tanh %187 : vector<8x32xf32>
    %189 = vector.extract_strided_slice %174 {offsets = [0, 96], sizes = [8, 32], strides = [1, 1]} : vector<8x128xf32> to vector<8x32xf32>
    %190 = arith.negf %189 : vector<8x32xf32>
    %191 = math.exp %190 : vector<8x32xf32>
    %cst_92 = arith.constant 1.000000e+00 : f32
    %192 = vector.broadcast %cst_92 : f32 to vector<8x32xf32>
    %193 = arith.addf %192, %191 : vector<8x32xf32>
    %194 = arith.divf %192, %193 : vector<8x32xf32>
    %c0_93 = arith.constant 0 : index
    %c0_94 = arith.constant 0 : index
    %195 = vector.load %arg10[%c0_93, %c0_94] : memref<8x32xf32, #tpu.memory_space<vmem>>, vector<8x32xf32>
    %196 = arith.mulf %186, %195 : vector<8x32xf32>
    %197 = arith.mulf %180, %188 : vector<8x32xf32>
    %198 = arith.addf %196, %197 : vector<8x32xf32>
    %199 = math.tanh %198 : vector<8x32xf32>
    %200 = arith.mulf %194, %199 : vector<8x32xf32>
    %c0_95 = arith.constant 0 : index
    %c0_96 = arith.constant 0 : index
    %201 = vector.load %arg10[%c0_95, %c0_96] : memref<8x32xf32, #tpu.memory_space<vmem>>, vector<8x32xf32>
    tpu.vector_store %arg10[%c0_95, %c0_96], %198 {strides = array<i32>} : memref<8x32xf32, #tpu.memory_space<vmem>>, vector<8x32xf32>,
    %c0_97 = arith.constant 0 : index
    %c0_98 = arith.constant 0 : index
    %202 = vector.load %arg9[%c0_97, %c0_98] : memref<8x32xf32, #tpu.memory_space<vmem>>, vector<8x32xf32>
    tpu.vector_store %arg9[%c0_97, %c0_98], %200 {strides = array<i32>} : memref<8x32xf32, #tpu.memory_space<vmem>>, vector<8x32xf32>,
    %203 = arith.index_cast %c4_i32 : i32 to index
    %c0_99 = arith.constant 0 : index
    %c0_100 = arith.constant 0 : index
    %204 = vector.load %arg8[%203, %c0_99, %c0_100] : memref<8x8x32xf32, #tpu.memory_space<vmem>>, vector<1x8x32xf32>
    %205 = vector.shape_cast %204 : vector<1x8x32xf32> to vector<8x32xf32>
    %206 = vector.shape_cast %200 : vector<8x32xf32> to vector<1x8x32xf32>
    tpu.vector_store %arg8[%203, %c0_99, %c0_100], %206 {strides = array<i32>} : memref<8x8x32xf32, #tpu.memory_space<vmem>>, vector<1x8x32xf32>,
    %c5_i32 = arith.constant 5 : i32
    %207 = arith.index_cast %c5_i32 : i32 to index
    %c0_101 = arith.constant 0 : index
    %c0_102 = arith.constant 0 : index
    %208 = vector.load %arg12[%207, %c0_101, %c0_102] : memref<8x8x128xf32, #tpu.memory_space<vmem>>, vector<1x8x128xf32>
    %209 = vector.shape_cast %208 : vector<1x8x128xf32> to vector<8x128xf32>
    %c0_103 = arith.constant 0 : index
    %c0_104 = arith.constant 0 : index
    %210 = vector.load %arg9[%c0_103, %c0_104] : memref<8x32xf32, #tpu.memory_space<vmem>>, vector<8x32xf32>
    %c0_105 = arith.constant 0 : index
    %c0_106 = arith.constant 0 : index
    %211 = vector.load %arg11[%c0_105, %c0_106] : memref<32x128xf32, #tpu.memory_space<vmem>>, vector<32x128xf32>
    %cst_107 = arith.constant dense<0.000000e+00> : vector<8x128xf32>
    %212 = tpu.matmul %210, %211, %cst_107 {dimension_numbers = #tpu.dot_dimension_numbers<[1], [0], [0], [1], [0, 0, 1, 1], [], []>} : vector<8x32xf32>, vector<32x128xf32>, vector<8x128xf32> -> vector<8x128xf32>
    %213 = arith.addf %209, %212 : vector<8x128xf32>
    %214 = vector.extract_strided_slice %213 {offsets = [0, 0], sizes = [8, 32], strides = [1, 1]} : vector<8x128xf32> to vector<8x32xf32>
    %215 = arith.negf %214 : vector<8x32xf32>
    %216 = math.exp %215 : vector<8x32xf32>
    %cst_108 = arith.constant 1.000000e+00 : f32
    %217 = vector.broadcast %cst_108 : f32 to vector<8x32xf32>
    %218 = arith.addf %217, %216 : vector<8x32xf32>
    %219 = arith.divf %217, %218 : vector<8x32xf32>
    %220 = vector.extract_strided_slice %213 {offsets = [0, 32], sizes = [8, 32], strides = [1, 1]} : vector<8x128xf32> to vector<8x32xf32>
    %221 = arith.negf %220 : vector<8x32xf32>
    %222 = math.exp %221 : vector<8x32xf32>
    %cst_109 = arith.constant 1.000000e+00 : f32
    %223 = vector.broadcast %cst_109 : f32 to vector<8x32xf32>
    %224 = arith.addf %223, %222 : vector<8x32xf32>
    %225 = arith.divf %223, %224 : vector<8x32xf32>
    %226 = vector.extract_strided_slice %213 {offsets = [0, 64], sizes = [8, 32], strides = [1, 1]} : vector<8x128xf32> to vector<8x32xf32>
    %227 = math.tanh %226 : vector<8x32xf32>
    %228 = vector.extract_strided_slice %213 {offsets = [0, 96], sizes = [8, 32], strides = [1, 1]} : vector<8x128xf32> to vector<8x32xf32>
    %229 = arith.negf %228 : vector<8x32xf32>
    %230 = math.exp %229 : vector<8x32xf32>
    %cst_110 = arith.constant 1.000000e+00 : f32
    %231 = vector.broadcast %cst_110 : f32 to vector<8x32xf32>
    %232 = arith.addf %231, %230 : vector<8x32xf32>
    %233 = arith.divf %231, %232 : vector<8x32xf32>
    %c0_111 = arith.constant 0 : index
    %c0_112 = arith.constant 0 : index
    %234 = vector.load %arg10[%c0_111, %c0_112] : memref<8x32xf32, #tpu.memory_space<vmem>>, vector<8x32xf32>
    %235 = arith.mulf %225, %234 : vector<8x32xf32>
    %236 = arith.mulf %219, %227 : vector<8x32xf32>
    %237 = arith.addf %235, %236 : vector<8x32xf32>
    %238 = math.tanh %237 : vector<8x32xf32>
    %239 = arith.mulf %233, %238 : vector<8x32xf32>
    %c0_113 = arith.constant 0 : index
    %c0_114 = arith.constant 0 : index
    %240 = vector.load %arg10[%c0_113, %c0_114] : memref<8x32xf32, #tpu.memory_space<vmem>>, vector<8x32xf32>
    tpu.vector_store %arg10[%c0_113, %c0_114], %237 {strides = array<i32>} : memref<8x32xf32, #tpu.memory_space<vmem>>, vector<8x32xf32>,
    %c0_115 = arith.constant 0 : index
    %c0_116 = arith.constant 0 : index
    %241 = vector.load %arg9[%c0_115, %c0_116] : memref<8x32xf32, #tpu.memory_space<vmem>>, vector<8x32xf32>
    tpu.vector_store %arg9[%c0_115, %c0_116], %239 {strides = array<i32>} : memref<8x32xf32, #tpu.memory_space<vmem>>, vector<8x32xf32>,
    %242 = arith.index_cast %c5_i32 : i32 to index
    %c0_117 = arith.constant 0 : index
    %c0_118 = arith.constant 0 : index
    %243 = vector.load %arg8[%242, %c0_117, %c0_118] : memref<8x8x32xf32, #tpu.memory_space<vmem>>, vector<1x8x32xf32>
    %244 = vector.shape_cast %243 : vector<1x8x32xf32> to vector<8x32xf32>
    %245 = vector.shape_cast %239 : vector<8x32xf32> to vector<1x8x32xf32>
    tpu.vector_store %arg8[%242, %c0_117, %c0_118], %245 {strides = array<i32>} : memref<8x8x32xf32, #tpu.memory_space<vmem>>, vector<1x8x32xf32>,
    %c6_i32 = arith.constant 6 : i32
    %246 = arith.index_cast %c6_i32 : i32 to index
    %c0_119 = arith.constant 0 : index
    %c0_120 = arith.constant 0 : index
    %247 = vector.load %arg12[%246, %c0_119, %c0_120] : memref<8x8x128xf32, #tpu.memory_space<vmem>>, vector<1x8x128xf32>
    %248 = vector.shape_cast %247 : vector<1x8x128xf32> to vector<8x128xf32>
    %c0_121 = arith.constant 0 : index
    %c0_122 = arith.constant 0 : index
    %249 = vector.load %arg9[%c0_121, %c0_122] : memref<8x32xf32, #tpu.memory_space<vmem>>, vector<8x32xf32>
    %c0_123 = arith.constant 0 : index
    %c0_124 = arith.constant 0 : index
    %250 = vector.load %arg11[%c0_123, %c0_124] : memref<32x128xf32, #tpu.memory_space<vmem>>, vector<32x128xf32>
    %cst_125 = arith.constant dense<0.000000e+00> : vector<8x128xf32>
    %251 = tpu.matmul %249, %250, %cst_125 {dimension_numbers = #tpu.dot_dimension_numbers<[1], [0], [0], [1], [0, 0, 1, 1], [], []>} : vector<8x32xf32>, vector<32x128xf32>, vector<8x128xf32> -> vector<8x128xf32>
    %252 = arith.addf %248, %251 : vector<8x128xf32>
    %253 = vector.extract_strided_slice %252 {offsets = [0, 0], sizes = [8, 32], strides = [1, 1]} : vector<8x128xf32> to vector<8x32xf32>
    %254 = arith.negf %253 : vector<8x32xf32>
    %255 = math.exp %254 : vector<8x32xf32>
    %cst_126 = arith.constant 1.000000e+00 : f32
    %256 = vector.broadcast %cst_126 : f32 to vector<8x32xf32>
    %257 = arith.addf %256, %255 : vector<8x32xf32>
    %258 = arith.divf %256, %257 : vector<8x32xf32>
    %259 = vector.extract_strided_slice %252 {offsets = [0, 32], sizes = [8, 32], strides = [1, 1]} : vector<8x128xf32> to vector<8x32xf32>
    %260 = arith.negf %259 : vector<8x32xf32>
    %261 = math.exp %260 : vector<8x32xf32>
    %cst_127 = arith.constant 1.000000e+00 : f32
    %262 = vector.broadcast %cst_127 : f32 to vector<8x32xf32>
    %263 = arith.addf %262, %261 : vector<8x32xf32>
    %264 = arith.divf %262, %263 : vector<8x32xf32>
    %265 = vector.extract_strided_slice %252 {offsets = [0, 64], sizes = [8, 32], strides = [1, 1]} : vector<8x128xf32> to vector<8x32xf32>
    %266 = math.tanh %265 : vector<8x32xf32>
    %267 = vector.extract_strided_slice %252 {offsets = [0, 96], sizes = [8, 32], strides = [1, 1]} : vector<8x128xf32> to vector<8x32xf32>
    %268 = arith.negf %267 : vector<8x32xf32>
    %269 = math.exp %268 : vector<8x32xf32>
    %cst_128 = arith.constant 1.000000e+00 : f32
    %270 = vector.broadcast %cst_128 : f32 to vector<8x32xf32>
    %271 = arith.addf %270, %269 : vector<8x32xf32>
    %272 = arith.divf %270, %271 : vector<8x32xf32>
    %c0_129 = arith.constant 0 : index
    %c0_130 = arith.constant 0 : index
    %273 = vector.load %arg10[%c0_129, %c0_130] : memref<8x32xf32, #tpu.memory_space<vmem>>, vector<8x32xf32>
    %274 = arith.mulf %264, %273 : vector<8x32xf32>
    %275 = arith.mulf %258, %266 : vector<8x32xf32>
    %276 = arith.addf %274, %275 : vector<8x32xf32>
    %277 = math.tanh %276 : vector<8x32xf32>
    %278 = arith.mulf %272, %277 : vector<8x32xf32>
    %c0_131 = arith.constant 0 : index
    %c0_132 = arith.constant 0 : index
    %279 = vector.load %arg10[%c0_131, %c0_132] : memref<8x32xf32, #tpu.memory_space<vmem>>, vector<8x32xf32>
    tpu.vector_store %arg10[%c0_131, %c0_132], %276 {strides = array<i32>} : memref<8x32xf32, #tpu.memory_space<vmem>>, vector<8x32xf32>,
    %c0_133 = arith.constant 0 : index
    %c0_134 = arith.constant 0 : index
    %280 = vector.load %arg9[%c0_133, %c0_134] : memref<8x32xf32, #tpu.memory_space<vmem>>, vector<8x32xf32>
    tpu.vector_store %arg9[%c0_133, %c0_134], %278 {strides = array<i32>} : memref<8x32xf32, #tpu.memory_space<vmem>>, vector<8x32xf32>,
    %281 = arith.index_cast %c6_i32 : i32 to index
    %c0_135 = arith.constant 0 : index
    %c0_136 = arith.constant 0 : index
    %282 = vector.load %arg8[%281, %c0_135, %c0_136] : memref<8x8x32xf32, #tpu.memory_space<vmem>>, vector<1x8x32xf32>
    %283 = vector.shape_cast %282 : vector<1x8x32xf32> to vector<8x32xf32>
    %284 = vector.shape_cast %278 : vector<8x32xf32> to vector<1x8x32xf32>
    tpu.vector_store %arg8[%281, %c0_135, %c0_136], %284 {strides = array<i32>} : memref<8x8x32xf32, #tpu.memory_space<vmem>>, vector<1x8x32xf32>,
    %c7_i32 = arith.constant 7 : i32
    %285 = arith.index_cast %c7_i32 : i32 to index
    %c0_137 = arith.constant 0 : index
    %c0_138 = arith.constant 0 : index
    %286 = vector.load %arg12[%285, %c0_137, %c0_138] : memref<8x8x128xf32, #tpu.memory_space<vmem>>, vector<1x8x128xf32>
    %287 = vector.shape_cast %286 : vector<1x8x128xf32> to vector<8x128xf32>
    %c0_139 = arith.constant 0 : index
    %c0_140 = arith.constant 0 : index
    %288 = vector.load %arg9[%c0_139, %c0_140] : memref<8x32xf32, #tpu.memory_space<vmem>>, vector<8x32xf32>
    %c0_141 = arith.constant 0 : index
    %c0_142 = arith.constant 0 : index
    %289 = vector.load %arg11[%c0_141, %c0_142] : memref<32x128xf32, #tpu.memory_space<vmem>>, vector<32x128xf32>
    %cst_143 = arith.constant dense<0.000000e+00> : vector<8x128xf32>
    %290 = tpu.matmul %288, %289, %cst_143 {dimension_numbers = #tpu.dot_dimension_numbers<[1], [0], [0], [1], [0, 0, 1, 1], [], []>} : vector<8x32xf32>, vector<32x128xf32>, vector<8x128xf32> -> vector<8x128xf32>
    %291 = arith.addf %287, %290 : vector<8x128xf32>
    %292 = vector.extract_strided_slice %291 {offsets = [0, 0], sizes = [8, 32], strides = [1, 1]} : vector<8x128xf32> to vector<8x32xf32>
    %293 = arith.negf %292 : vector<8x32xf32>
    %294 = math.exp %293 : vector<8x32xf32>
    %cst_144 = arith.constant 1.000000e+00 : f32
    %295 = vector.broadcast %cst_144 : f32 to vector<8x32xf32>
    %296 = arith.addf %295, %294 : vector<8x32xf32>
    %297 = arith.divf %295, %296 : vector<8x32xf32>
    %298 = vector.extract_strided_slice %291 {offsets = [0, 32], sizes = [8, 32], strides = [1, 1]} : vector<8x128xf32> to vector<8x32xf32>
    %299 = arith.negf %298 : vector<8x32xf32>
    %300 = math.exp %299 : vector<8x32xf32>
    %cst_145 = arith.constant 1.000000e+00 : f32
    %301 = vector.broadcast %cst_145 : f32 to vector<8x32xf32>
    %302 = arith.addf %301, %300 : vector<8x32xf32>
    %303 = arith.divf %301, %302 : vector<8x32xf32>
    %304 = vector.extract_strided_slice %291 {offsets = [0, 64], sizes = [8, 32], strides = [1, 1]} : vector<8x128xf32> to vector<8x32xf32>
    %305 = math.tanh %304 : vector<8x32xf32>
    %306 = vector.extract_strided_slice %291 {offsets = [0, 96], sizes = [8, 32], strides = [1, 1]} : vector<8x128xf32> to vector<8x32xf32>
    %307 = arith.negf %306 : vector<8x32xf32>
    %308 = math.exp %307 : vector<8x32xf32>
    %cst_146 = arith.constant 1.000000e+00 : f32
    %309 = vector.broadcast %cst_146 : f32 to vector<8x32xf32>
    %310 = arith.addf %309, %308 : vector<8x32xf32>
    %311 = arith.divf %309, %310 : vector<8x32xf32>
    %c0_147 = arith.constant 0 : index
    %c0_148 = arith.constant 0 : index
    %312 = vector.load %arg10[%c0_147, %c0_148] : memref<8x32xf32, #tpu.memory_space<vmem>>, vector<8x32xf32>
    %313 = arith.mulf %303, %312 : vector<8x32xf32>
    %314 = arith.mulf %297, %305 : vector<8x32xf32>
    %315 = arith.addf %313, %314 : vector<8x32xf32>
    %316 = math.tanh %315 : vector<8x32xf32>
    %317 = arith.mulf %311, %316 : vector<8x32xf32>
    %c0_149 = arith.constant 0 : index
    %c0_150 = arith.constant 0 : index
    %318 = vector.load %arg10[%c0_149, %c0_150] : memref<8x32xf32, #tpu.memory_space<vmem>>, vector<8x32xf32>
    tpu.vector_store %arg10[%c0_149, %c0_150], %315 {strides = array<i32>} : memref<8x32xf32, #tpu.memory_space<vmem>>, vector<8x32xf32>,
    %c0_151 = arith.constant 0 : index
    %c0_152 = arith.constant 0 : index
    %319 = vector.load %arg9[%c0_151, %c0_152] : memref<8x32xf32, #tpu.memory_space<vmem>>, vector<8x32xf32>
    tpu.vector_store %arg9[%c0_151, %c0_152], %317 {strides = array<i32>} : memref<8x32xf32, #tpu.memory_space<vmem>>, vector<8x32xf32>,
    %320 = arith.index_cast %c7_i32 : i32 to index
    %c0_153 = arith.constant 0 : index
    %c0_154 = arith.constant 0 : index
    %321 = vector.load %arg8[%320, %c0_153, %c0_154] : memref<8x8x32xf32, #tpu.memory_space<vmem>>, vector<1x8x32xf32>
    %322 = vector.shape_cast %321 : vector<1x8x32xf32> to vector<8x32xf32>
    %323 = vector.shape_cast %317 : vector<8x32xf32> to vector<1x8x32xf32>
    tpu.vector_store %arg8[%320, %c0_153, %c0_154], %323 {strides = array<i32>} : memref<8x8x32xf32, #tpu.memory_space<vmem>>, vector<1x8x32xf32>,
    %c8_i32 = arith.constant 8 : i32
    return
  }
  func.func @transform_0(%arg0: i32) -> (i32, i32, i32) {
    %c0_i32 = arith.constant 0 : i32
    %c0_i32_0 = arith.constant 0 : i32
    %c0_i32_1 = arith.constant 0 : i32
    return %arg0, %c0_i32, %c0_i32_0 : i32, i32, i32
  }
  func.func @transform_1(%arg0: i32) -> (i32, i32) {
    %c0_i32 = arith.constant 0 : i32
    %c0_i32_0 = arith.constant 0 : i32
    %c0_i32_1 = arith.constant 0 : i32
    return %c0_i32, %c0_i32_0 : i32, i32
  }
  func.func @transform_2(%arg0: i32) -> (i32, i32) {
    %c0_i32 = arith.constant 0 : i32
    %c0_i32_0 = arith.constant 0 : i32
    %c0_i32_1 = arith.constant 0 : i32
    return %c0_i32, %c0_i32_0 : i32, i32
  }
  func.func @transform_3(%arg0: i32) -> (i32, i32) {
    %c0_i32 = arith.constant 0 : i32
    %c0_i32_0 = arith.constant 0 : i32
    %c0_i32_1 = arith.constant 0 : i32
    return %c0_i32, %c0_i32_0 : i32, i32
  }
  func.func @transform_4(%arg0: i32) -> (i32, i32) {
    %c0_i32 = arith.constant 0 : i32
    %c0_i32_0 = arith.constant 0 : i32
    %c0_i32_1 = arith.constant 0 : i32
    return %c0_i32, %c0_i32_0 : i32, i32
  }
  func.func @transform_5(%arg0: i32) -> (i32, i32) {
    %c0_i32 = arith.constant 0 : i32
    %c0_i32_0 = arith.constant 0 : i32
    %c0_i32_1 = arith.constant 0 : i32
    return %c0_i32, %c0_i32_0 : i32, i32
  }
  func.func @transform_6(%arg0: i32) -> (i32, i32) {
    %c0_i32 = arith.constant 0 : i32
    %c0_i32_0 = arith.constant 0 : i32
    %c0_i32_1 = arith.constant 0 : i32
    return %c0_i32, %c0_i32_0 : i32, i32
  }
  func.func @transform_7(%arg0: i32) -> (i32, i32, i32) {
    %c0_i32 = arith.constant 0 : i32
    %c0_i32_0 = arith.constant 0 : i32
    %c0_i32_1 = arith.constant 0 : i32
    return %arg0, %c0_i32, %c0_i32_0 : i32, i32, i32
  }
}

</mosaic_0001>

<bundles_post_ra>
// kernel: tpu_custom_call.1
= control target key start
LH: loop header
LB: loop body
LE: loop exit
PB: predicated region body
PF: predicated region fallthrough
CT: control target
= control target key end

     0   :  { %s2730_s0 = inlined_call_operand.hbm [shape: f32[16,8,32], index: 0, kind: input, shape index: {}]   ;;  %s2731_s1 = inlined_call_operand.hbm [shape: f32[32,128], index: 1, kind: input, shape index: {}]   ;;  %s2732_s2 = inlined_call_operand.hbm [shape: f32[32,128], index: 2, kind: input, shape index: {}]   ;;  %s2733_s3 = inlined_call_operand.hbm [shape: f32[32,128], index: 3, kind: input, shape index: {}]   ;;  %s2734_s4 = inlined_call_operand.vmem [shape: f32[1,128], index: 4, kind: input, shape index: {}]   ;;  %s2735_s5 = inlined_call_operand.vmem [shape: f32[8,32], index: 5, kind: input, shape index: {}]   ;;  %s2736_s6 = inlined_call_operand.hbm [shape: f32[8,32], index: 6, kind: input, shape index: {}]   ;;  %s2737_s7 = inlined_call_operand.hbm [shape: f32[16,8,32], index: 7, kind: output, shape index: {}]  }
   0x1   :  { %2744 = sst [smem:[#allocation20_spill]] %s2731_s1 }
   0x2   :  { %12 = vsyncpa [#allocation7], 0 }
   0x3   :  { %14 = vsyncpa [#allocation7 + $0x1], 0 }
   0x4   :  { %15 = vsyncpa [#allocation10], 0 }
   0x5   :  { %16 = vsyncpa [#allocation13], 0 }
   0x6   :  { %17 = vsyncpa [#allocation8], 0 }
   0x7   :  { %19 = vsyncpa [#allocation8 + $0x1], 0  ;;  %s2282_s24 = smov 0   ;;  %s2284_s25 = smov 0  }
   0x8   :  { %s2286_s26 = smov 0   ;;  %s2288_s27 = smov 0  }
   0x9 LB: > { %s2303_s28 = sadd.s32 4294967295, %s2225_s27   ;;  %s1644_s29 = sadd.s32 4294967294, %s2225_s27   ;;  %s2225_s27 = sphi %s2288_s27, %s2767_s27   ;;  %s2221_s26 = sphi %s2286_s26, %s2766_s26   ;;  %s2217_s25 = sphi %s2284_s25, %s2765_s25   ;;  %s2213_s24 = sphi %s2282_s24, %s2764_s24  }
   0xa   : > { %p45_p0 = scmp.ne.s32.totalorder %s2217_s25, %s2213_s24  ;;  %p2738_p1 = scmp.eq.s32.totalorder %s2303_s28, 0 }
   0xb   : > { %p195_p2 = scmp.eq.s32.totalorder %s2303_s28, 1  ;;  %p201_p3 = scmp.eq.s32.totalorder %s1644_s29, 1 }
   0xc   : > { %p2312_p4 = por %p2738_p1, %p45_p0  ;;  %p1645_p5 = scmp.ge.s32.totalorder %s2225_s27, 1 }
   0xd   : > { %p2317_p6 = por %p201_p3, %p45_p0  ;;  %p208_p7 = scmp.lt.s32.totalorder %s2225_s27, 3 }
   0xe   : > { %s2745_s30 = scalar_select %p2312_p4, 1, 0 }
   0xf   : > { %s2746_s8 = scalar_select %p2317_p6, 1, 0 }
  0x10   : > { %p2323_p9 = pnand %p1645_p5, %p208_p7  ;;  %s2227_s10 = smov [#allocation9]  }
  0x11   : > { %s220_s11 = sshll.u32 %s2227_s10, 4  ;;  %s2228_s13 = smov [#allocation12]   ;;  %s221_s11 = int_to_ptr.vmem [resolvable:$true] %s220_s11 }
  0x12   : > { %s2747_s9 = scalar_select %p2323_p9, 1, 0 }
  0x13   : > { %p1881_p10 = pneg %p2323_p9  ;;  %s246_s14 = sshll.u32 %s2228_s13, 4  ;;  %s247_s14 = int_to_ptr.vmem [resolvable:$true] %s246_s14 }
  0x14   : > { %s2229_s15 = smov [#allocation11]   ;;  %s2032_s17 = scalar_lea.vmem %s221_s11, 512 }
  0x15   : > { %p2332_p12 = pnand %p1881_p10, %p2738_p1  ;;  %s233_s16 = sshll.u32 %s2229_s15, 4  ;;  %s234_s16 = int_to_ptr.vmem [resolvable:$true] %s233_s16 }
  0x16   : > { %p2033_p0 = scmp.ne.s32.totalorder %s221_s11, %s2032_s17  ;;  %p2040_p7 = scmp.lt.s32.totalorder %s221_s11, %s221_s11 }
  0x17   : > { %p2023_p13 = pneg %p2332_p12  ;;  %p2041_p10 = scmp.lt.s32.totalorder %s2032_s17, %s2032_s17 }
  0x19   : > { %p2035_p3 = pnand %p2033_p0, %p2023_p13  ;;  %p2042_p11 = por %p2041_p10, %p2040_p7 }
  0x1b   : > { %p2036_p5 = pneg %p2035_p3 }
  0x1d   : > { %p2043_p8 = pnand %p2042_p11, %p2036_p5 }
  0x1f   : > { %2046 = shalt.err (!%p2043_p8)
}
  0x20   : > { %s2739_s18 = smov 128   ;;  %s2740_s19 = smov 8  }
  0x21   : > { %s2749_s1 = sld [smem:[#allocation20_spill]]  ;;  %s2058_s22 = scalar_lea.vmem %s247_s14, 512 }
  0x22   : > { %p2059_p0 = scmp.ne.s32.totalorder %s247_s14, %s2058_s22  ;;  %p2066_p11 = scmp.lt.s32.totalorder %s247_s14, %s247_s14 }
  0x23   : > { %p2067_p8 = scmp.lt.s32.totalorder %s2058_s22, %s2058_s22 }
  0x24   : > { %p2061_p3 = pnand %p2059_p0, %p2023_p13 }
  0x25   : > { %p2068_p5 = por %p2067_p8, %p2066_p11 }
  0x26   : > { %p2062_p7 = pneg %p2061_p3 }
  0x27   : > { %1884 = dma.hbm_to_vmem [thread:$0]  (!%p2332_p12), %s2749_s1, 512, %s221_s11, [#allocation10], %s2739_s18, %s2739_s18, %s2740_s19  }
  0x28   : > { %p2069_p10 = pnand %p2068_p5, %p2062_p7 }
  0x2a   : > { %2072 = shalt.err (!%p2069_p10)
}
  0x2b   : > { %1890 = dma.hbm_to_vmem [thread:$0]  (!%p2332_p12), %s2733_s3, 512, %s247_s14, [#allocation13], %s2739_s18, %s2739_s18, %s2740_s19  }
  0x2c   : > { %s2084_s10 = scalar_lea.vmem %s234_s16, 512  ;;  %p2092_p11 = scmp.lt.s32.totalorder %s234_s16, %s234_s16 }
  0x2d   : > { %p2085_p1 = scmp.ne.s32.totalorder %s234_s16, %s2084_s10  ;;  %p2093_p7 = scmp.lt.s32.totalorder %s2084_s10, %s2084_s10 }
  0x2f   : > { %p2087_p0 = pnand %p2085_p1, %p2023_p13  ;;  %p2094_p8 = por %p2093_p7, %p2092_p11 }
  0x31   : > { %p2088_p3 = pneg %p2087_p0 }
  0x33   : > { %p2095_p5 = pnand %p2094_p8, %p2088_p3 }
  0x35   : > { %2098 = shalt.err (!%p2095_p5)
}
  0x36   : > { %1887 = dma.hbm_to_vmem [thread:$0]  (!%p2332_p12), %s2732_s2, 512, %s234_s16, [#allocation10], %s2739_s18, %s2739_s18, %s2740_s19  }
  0x37   : > { %s2232_s14 = smov [#allocation14]  }
  0x38   : > { %s266_s15 = sshll.u32 %s2232_s14, 4  ;;  %s267_s15 = int_to_ptr.vmem [resolvable:$true] %s266_s15 }
  0x39   : > { %s2110_s17 = scalar_lea.vmem %s267_s15, 128  ;;  %p2118_p3 = scmp.lt.s32.totalorder %s267_s15, %s267_s15 }
  0x3a   : > { %p2111_p1 = scmp.ne.s32.totalorder %s267_s15, %s2110_s17  ;;  %p2119_p11 = scmp.lt.s32.totalorder %s2110_s17, %s2110_s17 }
  0x3c   : > { %p2113_p10 = pnand %p2111_p1, %p2023_p13  ;;  %p2120_p7 = por %p2119_p11, %p2118_p3 }
  0x3e   : > { %p2114_p0 = pneg %p2113_p10 }
  0x40   : > { %p2121_p8 = pnand %p2120_p7, %p2114_p0 }
  0x42   : > { %2124 = shalt.err (!%p2121_p8)
}
  0x43   : > { %1893 = dma.hbm_to_vmem [thread:$0]  (!%p2332_p12), %s2736_s6, 128, %s267_s15, [#allocation13]  }
  0x44   : > { %s2380_s16 = sadd.s32 1, %s2225_s27   ;;  %s32_s22 = sadd.s32 1, %s2221_s26 }
  0x45   : > { %s29_s12 = ssub.s32 %s2225_s27, %s2380_s16  ;;  %p39_p13 = scmp.ne.s32.totalorder %s2221_s26, %s2217_s25 }
  0x46   : > { %p30_p5 = scmp.eq.s32.totalorder %s29_s12, 0  ;;  %p40_p1 = scmp.eq.s32.totalorder %s2225_s27, 0 }
  0x47   : > { %p2390_p10 = por %p195_p2, %p39_p13  ;;  %p1906_p0 = scmp.lt.s32.totalorder %s2225_s27, 2 }
  0x48   : > { %s2396_s29 = scalar_select %p30_p5, %s2221_s26, %s32_s22  }
  0x49   : > { %s2750_s23 = scalar_select %p2390_p10, 1, 0 }
  0x4a   : > { %p41_p3 = por %p40_p1, %p39_p13  ;;  %s277_s10 = sand.u32 1, %s2221_s26  }
  0x4b   : > { %s1651_s11 = sshll.u32 %s277_s10, 6  ;;  %s1699_s13 = sshll.u32 %s2225_s27, 10 }
  0x4c   : > { %s2403_s17 = scalar_lea.hbm %s2730_s0, %s1699_s13  ;;  %s281_s20 = scalar_lea.vmem [#allocation6], %s1651_s11 }
  0x4d   : > { %s288_s21 = sshll.u32 %s281_s20, 4  ;;  %p2407_p2 = pnand %p1906_p0, %p41_p3  ;;  %s2405_s21 = int_to_ptr.vmem [resolvable:$true] %s288_s21 }
  0x4e   : > { %s2411_s22 = scalar_lea.sflag [#allocation7], %s277_s10  ;;  %s2125_s18 = scalar_lea.hbm %s2403_s17, 1024 }
  0x4f   : > { %p2126_p12 = scmp.ne.s32.totalorder %s2403_s17, %s2125_s18  ;;  %p2127_p11 = pneg %p2407_p2 }
  0x50   : > { %s2130_s11 = scalar_lea.hbm %s2730_s0, 2048  ;;  %p2131_p13 = scmp.lt.s32.totalorder %s2403_s17, %s2730_s0 }
  0x51   : > { %p2128_p7 = pnand %p2127_p11, %p2126_p12  ;;  %p2132_p5 = scmp.lt.s32.totalorder %s2130_s11, %s2125_s18 }
  0x53   : > { %p2129_p8 = pneg %p2128_p7  ;;  %p2133_p1 = por %p2132_p5, %p2131_p13 }
  0x55   : > { %p2134_p0 = pnand %p2133_p1, %p2129_p8 }
  0x57   : > { %2137 = shalt.err (!%p2134_p0)
}
  0x58   : > { %s2138_s10 = scalar_lea.vmem %s2405_s21, 1024  ;;  %s2233_s19 = smov [#allocation6]  }
  0x59   : > { %p2139_p3 = scmp.ne.s32.totalorder %s2405_s21, %s2138_s10  ;;  %s2143_s1 = sshll.u32 %s2233_s19, 4  ;;  %s2144_s1 = int_to_ptr.vmem [resolvable:$false] %s2143_s1 }
  0x5a   : > { %s2145_s13 = scalar_lea.vmem %s2144_s1, 2048  ;;  %p2146_p7 = scmp.lt.s32.totalorder %s2405_s21, %s2144_s1 }
  0x5b   : > { %p2141_p6 = pnand %p2139_p3, %p2127_p11  ;;  %p2147_p10 = scmp.lt.s32.totalorder %s2145_s13, %s2138_s10 }
  0x5d   : > { %p2142_p12 = pneg %p2141_p6  ;;  %p2148_p4 = por %p2147_p10, %p2146_p7 }
  0x5f   : > { %p2149_p9 = pnand %p2148_p4, %p2142_p12 }
  0x61   : > { %2152 = shalt.err (!%p2149_p9)
}
  0x62   : > { %s2752_s18 = smov 8   ;;  %s2753_s14 = smov 128  }
  0x63   : > { %1897 = dma.hbm_to_vmem [thread:$0]  (!%p2407_p2), %s2403_s17, 1024, %s2405_s21, %s2411_s22, %s2753_s14, %s2753_s14, %s2752_s18  }
  0x64   : > { %p2754_p6 = scmp.ne.s32.totalorder %s2747_s9, 0 }
  0x65   : > { %s2438_s19 = sand.u32 (!%p2754_p6), 1, %s2217_s25   ;;  %p2755_p4 = scmp.ne.s32.totalorder (!%p2754_p6), %s2745_s30, 0 }
  0x66   : > { %300 = sbr.rel (%p2754_p6) target bundleno = 5725 (0x165d), region = 48  ;;  %s1655_s1 = sshll.u32 (!%p2754_p6), %s2438_s19, 6 }
  0x67   : > { %s303_s11 = scalar_lea.sflag (!%p2754_p6), [#allocation7], %s2438_s19  ;;  %s2442_s15 = scalar_lea.vmem (!%p2754_p6), [#allocation6], %s1655_s1 }
  0x6b   : > { %2196 = dma.done.wait (%p2755_p4), %s303_s11, 1024  }
  0x6c   : > { %2198 = vsyncadd (%p2755_p4), %s303_s11, 4294966272  ;;  %p2756_p9 = scmp.eq.s32.totalorder %s2303_s28, 0 }
  0x6e   : > { %2200 = dma.done.wait (%p2756_p9), [#allocation10], 1024   ;;  %p2757_p10 = pmov %p2756_p9 }
  0x6f   : > { %p2758_p2 = pmov %p2756_p9 }
  0x70   : > { %2202 = vsyncadd (%p2757_p10), [#allocation10], 4294966272 }
  0x71   : > { %2204 = dma.done.wait (%p2758_p2), [#allocation13], 640   ;;  %p2759_p11 = pmov %p2758_p2 }
  0x72   : > { %s2456_s9 = scalar_lea.vmem [#allocation15], %s1655_s1  ;;  %p2760_p8 = scmp.ne.s32.totalorder %s2303_s28, 0 }
  0x73   : > { %2206 = vsyncadd (%p2759_p11), [#allocation13], 4294966656 }
  0x74   : > { %358 = sbr.rel (%p2760_p8) target bundleno = 129 (0x81), region = 72 }
  0x79   : > { %v359_v0 = vld [vmem:[%s2735_s5] sm:$0xff]  ;;  %vm360_vm0 = vcmask 261120   ;;  %v362_v1 = vld [vmem:[#allocation14] sm:$0xff]  ;;  %v365_v4 = vld [vmem:[#allocation12 + $0x8] sm:$0xff] }
  0x7a   : > { %v364_v2 = vld [vmem:[#allocation12] sm:$0xff]  ;;  %361 = vst.msk [vmem:[#allocation2] sm:$0xff] %vm360_vm0, %v359_v0  ;;  %363 = vst.msk [vmem:[#allocation3] sm:$0xff] %vm360_vm0, %v362_v1  ;;  %v373_v5 = vld [vmem:[#allocation11 + $0x8] sm:$0xff]  ;;  %vm369_vm2 = vcmp.ge.f32.partialorder %v365_v4, 0.5 }
  0x7b   : > { %vm368_vm1 = vcmp.ge.f32.partialorder %v364_v2, 0.5  ;;  %v372_v3 = vld [vmem:[#allocation11] sm:$0xff]  ;;  %v377_v7 = vmul.f32 2.0, %v373_v5  ;;  %v366_v8 = vld [vmem:[#allocation12 + $0x10] sm:$0xff]  ;;  %v367_v10 = vld [vmem:[#allocation12 + $0x18] sm:$0xff] }
  0x7c   : > { %v376_v6 = vmul.f32 2.0, %v372_v3  ;;  %v374_v9 = vld [vmem:[#allocation11 + $0x10] sm:$0xff]  ;;  %vm370_vm3 = vcmp.ge.f32.partialorder %v366_v8, 0.5  ;;  %vm371_vm4 = vcmp.ge.f32.partialorder %v367_v10, 0.5  ;;  %v375_v12 = vld [vmem:[#allocation11 + $0x18] sm:$0xff] }
  0x7d   : > { %v378_v11 = vmul.f32 2.0, %v374_v9  ;;  %v381_v14 = vsel %vm369_vm2, %v377_v7, 0.0  ;;  %v379_v15 = vmul.f32 2.0, %v375_v12 }
  0x7e   : > { %v380_v13 = vsel %vm368_vm1, %v376_v6, 0.0  ;;  %385 = vst [vmem:[#allocation4] sm:$0xff] %v381_v14 }
  0x7f   : > { %384 = vst [vmem:[#allocation4 + $0x10] sm:$0xff] %v380_v13  ;;  %v382_v16 = vsel %vm370_vm3, %v378_v11, 0.0  ;;  %v383_v17 = vsel %vm371_vm4, %v379_v15, 0.0 }
  0x80   : > { %386 = vst [vmem:[#allocation4 + $0x18] sm:$0xff] %v382_v16  ;;  %387 = vst [vmem:[#allocation4 + $0x8] sm:$0xff] %v383_v17 }
  0x81 PF: > { %v399_v18 = vld [vmem:[#allocation9 + $0x18] sm:$0xff]  ;;  %v398_v19 = vld [vmem:[#allocation9 + $0x10] sm:$0xff]  ;;  %v2234_v21 = vmov 0.0   ;;  %v397_v23 = vld [vmem:[#allocation9 + $0x8] sm:$0xff]  ;;  %vm407_vm5 = vcmask 261120   ;;  %vm2235_vm6 = vmmov 0  }
  0x82   : > { %1753 = vmatprep.subr.mxu0 %v399_v18  ;;  %1773 = vmatprep.subr.mxu1 %v2234_v21  ;;  %v388_v24 = vld [vmem:[%s2442_s15] sm:$0xff]  ;;  %v389_v27 = vld [vmem:[%s2442_s15 + $0x8] sm:$0xff]  ;;  %v546_v29 = vld [vmem:[#allocation2] sm:$0xff]  ;;  %s2236_s22 = smov 64   ;;  %s2237_s20 = smov 32  }
  0x83   : > { %1754 = vmatpush3.msra.mxu0 %v399_v18  ;;  %v396_v25 = vld [vmem:[#allocation9] sm:$0xff]  ;;  %1761 = vmatprep.mubr.msk.f32.mxu0 %vm407_vm5, %v388_v24  ;;  %v2509_v31 = vld [vmem:[%s2734_s4] ss:$0 sm:$0xff]  ;;  %v632_v38 = vld [vmem:[#allocation3] sm:$0xff]  ;;  %s2238_s10 = smov 96   ;;  %s1700_s13 = sshll.u32 %s2303_s28, 10 }
  0x84   : > { %1755 = vmatprep.subr.mxu0 %v398_v19  ;;  %1781 = vmatprep.mubr.msk.f32.mxu1 %vm2235_vm6, %v2234_v21  ;;  %v390_v8 = vld [vmem:[%s2442_s15 + $0x10] sm:$0xff]  ;;  %v391_v9 = vld [vmem:[%s2442_s15 + $0x18] sm:$0xff]  ;;  %v392_v10 = vld [vmem:[%s2442_s15 + $0x20] sm:$0xff]  ;;  %s1533_s18 = sshll.u32 %s2456_s9, 4  ;;  %s2682_s11 = scalar_lea.hbm %s2737_s7, %s1700_s13  ;;  %s2684_s18 = int_to_ptr.vmem [resolvable:$true] %s1533_s18 }
  0x85   : > { %1756 = vmatpush3.msra.mxu0 %v398_v19  ;;  %v2472_v26 = vld [vmem:[#allocation4] sm:$0xff]  ;;  %v393_v11 = vld [vmem:[%s2442_s15 + $0x28] sm:$0xff]  ;;  %v394_v12 = vld [vmem:[%s2442_s15 + $0x30] sm:$0xff]  ;;  %s2153_s17 = scalar_lea.vmem %s2684_s18, 1024  ;;  %p2761_p5 = scmp.ne.s32.totalorder %s2750_s23, 0 }
  0x86   : > { %1757 = vmatprep.subr.mxu0 %v397_v23  ;;  %v2477_v28 = vld [vmem:[#allocation4 + $0x10] sm:$0xff]  ;;  %v395_v13 = vld [vmem:[%s2442_s15 + $0x38] sm:$0xff]  ;;  %s1520_s15 = scalar_lea.sflag [#allocation8], %s2438_s19  ;;  %p2154_p13 = scmp.ne.s32.totalorder %s2684_s18, %s2153_s17 }
  0x87   : > { %v2463_v20 = vld [vmem:[#allocation4 + $0x8] sm:$0xff]  ;;  %v2466_v22 = vld [vmem:[#allocation4 + $0x18] sm:$0xff]  ;;  %1758 = vmatpush3.msra.mxu0 %v397_v23  ;;  %s2239_s28 = smov [#allocation15]  }
  0x88   : > { %1774 = vmatpush3.msra.mxu1 %v2463_v20  ;;  %1759 = vmatprep.subr.mxu0 %v396_v25  ;;  %p2155_p1 = pnand %p2154_p13, %p2761_p5  ;;  %s2157_s30 = sshll.u32 %s2239_s28, 4  ;;  %s2158_s30 = int_to_ptr.vmem [resolvable:$false] %s2157_s30 }
  0x89   : > { %1775 = vmatprep.subr.mxu1 %v2234_v21  ;;  %1760 = vmatpush3.msra.mxu0 %v396_v25  ;;  %s2159_s21 = scalar_lea.vmem %s2158_s30, 2048  ;;  %p2160_p3 = scmp.lt.s32.totalorder %s2684_s18, %s2158_s30 }
  0x8a   : > { %1776 = vmatpush3.msra.mxu1 %v2466_v22  ;;  %1762 = vmatmul.mubr.msk.f32.vlgmr.msra.gmra.mxu0 %vm407_vm5, %v389_v27  ;;  %p2156_p0 = pneg %p2155_p1  ;;  %p2161_p12 = scmp.lt.s32.totalorder %s2159_s21, %s2153_s17 }
  0x8b   : > { %1777 = vmatprep.subr.mxu1 %v2234_v21  ;;  %1795 = vmatprep.subr.mxu0 %v2234_v21 }
  0x8c   : > { %1778 = vmatpush3.msra.mxu1 %v2472_v26  ;;  %1796 = vmatpush3.msra.mxu0 %v2463_v20  ;;  %p2162_p7 = por %p2161_p12, %p2160_p3 }
  0x8d   : > { %1779 = vmatprep.subr.mxu1 %v2234_v21  ;;  %1797 = vmatprep.subr.mxu0 %v2234_v21 }
  0x8e   : > { %1780 = vmatpush3.msra.mxu1 %v2477_v28  ;;  %1798 = vmatpush3.msra.mxu0 %v2466_v22  ;;  %p2163_p6 = pnand %p2162_p7, %p2156_p0 }
  0x8f   : > { %1784 = vmatprep.subr.mxu1 %v2234_v21  ;;  %1782 = vmatmul.mubr.msk.f32.vlgmr.msra.gmra.mxu1 %vm407_vm5, %v546_v29 }
  0x90   : > { %1785 = vmatpush3.msra.mxu1 %v2463_v20  ;;  %1792 = vmatprep.mubr.msk.f32.mxu1 %vm2235_vm6, %v2234_v21 }
  0x91   : > { %1786 = vmatprep.subr.mxu1 %v2234_v21  ;;  %1799 = vmatprep.subr.mxu0 %v2234_v21 }
  0x92   : > { %1787 = vmatpush3.msra.mxu1 %v2466_v22  ;;  %1800 = vmatpush3.msra.mxu0 %v2472_v26 }
  0x93   : > { %1788 = vmatprep.subr.mxu1 %v2234_v21  ;;  %1801 = vmatprep.subr.mxu0 %v2234_v21 }
  0x94   : > { %1789 = vmatpush3.msra.mxu1 %v2472_v26  ;;  %1802 = vmatpush3.msra.mxu0 %v2477_v28 }
  0x95   : > { %1790 = vmatprep.subr.mxu1 %v2234_v21  ;;  %1817 = vmatprep.subr.mxu0 %v2234_v21 }
  0x96   : > { %1791 = vmatpush3.msra.mxu1 %v2477_v28  ;;  %1764 = vmatprep.mubr.msk.f32.mxu0 %vm407_vm5, %v390_v8 }
  0x97   : > { %1806 = vmatprep.subr.mxu1 %v2234_v21  ;;  %1765 = vmatmul.mubr.msk.f32.gmra.mxu0 %vm407_vm5, %v391_v9 }
  0x98   : > { %1767 = vmatprep.mubr.msk.f32.mxu0 %vm407_vm5, %v392_v10 }
  0x9b   : > { %1768 = vmatmul.mubr.msk.f32.gmra.mxu0 %vm407_vm5, %v393_v11 }
  0x9c   : > { %1770 = vmatprep.mubr.msk.f32.mxu0 %vm407_vm5, %v394_v12 }
  0x9f   : > { %1771 = vmatmul.mubr.msk.f32.gmra.mxu0 %vm407_vm5, %v395_v13 }
  0xa0   : > { %1803 = vmatprep.mubr.msk.f32.mxu0 %vm2235_vm6, %v2234_v21 }
 0x14a   : > { %v1763_v30 = vpop.f32.mrf.mxu0 }
 0x14b   : > { %v504_v56 = vadd.f32 %v1763_v30, %v2509_v31 }
 0x14c   : > { %v498_v32 = vpop.f32.mrf.mxu0 }
 0x14d   : > { %v499_v34 = vadd.f32 %v2509_v31, %v498_v32 }
 0x14f   : > { %v620_v33 = vpop.f32.mrf.mxu1 }
 0x150   : > { %v624_v36 = vadd.f32 %v620_v33, %v499_v34 }
 0x151   : > { %v1783_v35 = vpop.f32.mrf.mxu1 }
 0x152   : > { %1957 = vtanh.f32 %v624_v36  ;;  %v1672_v39 = vmul.f32 -1.442695, %v624_v36 }
 0x154   : > { %1959 = vpow2.f32 %v1672_v39 }
 0x157   : > { %v1766_v23 = vpop.f32.mrf.mxu0 }
 0x159   : > { %v508_v24 = vpop.f32.mrf.mxu0 }
 0x15a   : > { %v509_v32 = vadd.f32 %v2509_v31, %v508_v24 }
 0x15b   : > { %v2570_v25 = vpop.f32.mrf.mxu0 }
 0x15d   : > { %v2572_v27 = vpop.f32.mrf.mxu0 }
 0x15e   : > { %v519_v12 = vadd.f32 %v2509_v31, %v2572_v27 }
 0x15f   : > { %v1958_v37 = vpop.eup %1957  ;;  %v2574_v29 = vpop.f32.mrf.mxu0 }
 0x160   : > { %639 = vrot.lane.b32.xlu0 %v1958_v37, %s2236_s22 }
 0x161   : > { %v1960_v40 = vpop.eup %1959  ;;  %v2576_v30 = vpop.f32.mrf.mxu0 }
 0x162   : > { %v628_v41 = vadd.f32 1.0, %v1960_v40 }
 0x164   : > { %634 = vrot.lane.b32.xlu0 %v632_v38, %s2237_s20  ;;  %1961 = vrcp.f32 %v628_v41 }
 0x171   : > { %v1962_v42 = vpop.eup %1961 }
 0x1d2   : > { %v640_v43 = vpop.permute.xlu0 %639 }
 0x1d3   : > { %v642_v44 = vmul.f32 %v1962_v42, %v640_v43 }
 0x1d5   : > { %644 = vrot.lane.b32.xlu1 %v642_v44, %s2237_s20 }
 0x1d6   : > { %v635_v45 = vpop.permute.xlu0 %634 }
 0x1d7   : > { %v637_v46 = vmul.f32 %v1962_v42, %v635_v45 }
 0x247   : > { %v645_v47 = vpop.permute.xlu1 %644 }
 0x248   : > { %v647_v48 = vadd.f32 %v645_v47, %v637_v46 }
 0x24a   : > { %1963 = vtanh.f32 %v647_v48 }
 0x257   : > { %v1964_v49 = vpop.eup %1963 }
 0x258   : > { %650 = vrot.lane.b32.xlu1 %v1964_v49, %s2236_s22 }
 0x25c   : > { %655 = vrot.lane.b32.xlu1 %v647_v48, %s2238_s10 }
 0x2ca   : > { %v651_v50 = vpop.permute.xlu1 %650 }
 0x2cb   : > { %v653_v51 = vmul.f32 %v1962_v42, %v651_v50 }
 0x2cd   : > { %660 = vrot.lane.b32.xlu0 %v653_v51, %s2237_s20 }
 0x2ce   : > { %v656_v52 = vpop.permute.xlu1 %655 }
 0x2cf   : > { %658 = vst.msk [vmem:[#allocation3] sm:$0xff] %vm407_vm5, %v656_v52 }
 0x2d6   : > { %v753_v53 = vld [vmem:[#allocation3] sm:$0xff] }
 0x2d7   : > { %755 = vrot.lane.b32.xlu1 %v753_v53, %s2237_s20 }
 0x33f   : > { %v661_v54 = vpop.permute.xlu0 %660 }
 0x340   : > { %663 = vst.msk [vmem:[#allocation2] sm:$0xff] %vm407_vm5, %v661_v54  ;;  %664 = vst.msk [vmem:[%s2456_s9] sm:$0xff] %vm407_vm5, %v661_v54  ;;  %v514_v54 = vadd.f32 %v1766_v23, %v2509_v31 }
 0x347   : > { %v667_v55 = vld [vmem:[#allocation2] sm:$0xff] }
 0x348   : > { %1793 = vmatmul.mubr.msk.f32.vlgmr.msra.gmra.mxu1 %vm407_vm5, %v667_v55 }
 0x349   : > { %1807 = vmatpush3.msra.mxu1 %v2463_v20  ;;  %1814 = vmatprep.mubr.msk.f32.mxu1 %vm2235_vm6, %v2234_v21  ;;  %v756_v3 = vpop.permute.xlu1 %755 }
 0x34a   : > { %1808 = vmatprep.subr.mxu1 %v2234_v21 }
 0x34b   : > { %1809 = vmatpush3.msra.mxu1 %v2466_v22 }
 0x34c   : > { %1810 = vmatprep.subr.mxu1 %v2234_v21 }
 0x34d   : > { %1811 = vmatpush3.msra.mxu1 %v2472_v26 }
 0x34e   : > { %1812 = vmatprep.subr.mxu1 %v2234_v21 }
 0x34f   : > { %1813 = vmatpush3.msra.mxu1 %v2477_v28 }
 0x350   : > { %1828 = vmatprep.subr.mxu1 %v2234_v21 }
 0x408   : > { %v741_v57 = vpop.f32.mrf.mxu1 }
 0x409   : > { %v745_v58 = vadd.f32 %v741_v57, %v504_v56 }
 0x40a   : > { %v1794_v59 = vpop.f32.mrf.mxu1 }
 0x40b   : > { %1965 = vtanh.f32 %v745_v58  ;;  %v1674_v61 = vmul.f32 -1.442695, %v745_v58 }
 0x40d   : > { %1967 = vpow2.f32 %v1674_v61 }
 0x418   : > { %v1966_v60 = vpop.eup %1965 }
 0x419   : > { %760 = vrot.lane.b32.xlu0 %v1966_v60, %s2236_s22 }
 0x41a   : > { %v1968_v62 = vpop.eup %1967 }
 0x41b   : > { %v749_v63 = vadd.f32 1.0, %v1968_v62 }
 0x41d   : > { %1969 = vrcp.f32 %v749_v63 }
 0x42a   : > { %v1970_v0 = vpop.eup %1969 }
 0x42b   : > { %v758_v4 = vmul.f32 %v1970_v0, %v756_v3 }
 0x48b   : > { %v761_v1 = vpop.permute.xlu0 %760 }
 0x48c   : > { %v763_v2 = vmul.f32 %v1970_v0, %v761_v1 }
 0x48e   : > { %765 = vrot.lane.b32.xlu0 %v763_v2, %s2237_s20 }
 0x500   : > { %v766_v5 = vpop.permute.xlu0 %765 }
 0x501   : > { %v768_v6 = vadd.f32 %v766_v5, %v758_v4 }
 0x503   : > { %1971 = vtanh.f32 %v768_v6 }
 0x510   : > { %v1972_v7 = vpop.eup %1971 }
 0x511   : > { %771 = vrot.lane.b32.xlu1 %v1972_v7, %s2236_s22 }
 0x515   : > { %776 = vrot.lane.b32.xlu1 %v768_v6, %s2238_s10 }
 0x583   : > { %v772_v14 = vpop.permute.xlu1 %771 }
 0x584   : > { %v774_v15 = vmul.f32 %v1970_v0, %v772_v14 }
 0x586   : > { %781 = vrot.lane.b32.xlu0 %v774_v15, %s2237_s20 }
 0x587   : > { %v777_v16 = vpop.permute.xlu1 %776 }
 0x588   : > { %779 = vst.msk [vmem:[#allocation3] sm:$0xff] %vm407_vm5, %v777_v16 }
 0x58f   : > { %v875_v17 = vld [vmem:[#allocation3] sm:$0xff] }
 0x590   : > { %877 = vrot.lane.b32.xlu1 %v875_v17, %s2237_s20 }
 0x5f8   : > { %v782_v18 = vpop.permute.xlu0 %781 }
 0x5f9   : > { %784 = vst.msk [vmem:[#allocation2] sm:$0xff] %vm407_vm5, %v782_v18  ;;  %1675 = vst.msk [vmem:[%s2456_s9 + $0x8] sm:$0xff] %vm407_vm5, %v782_v18 }
 0x600   : > { %v789_v19 = vld [vmem:[#allocation2] sm:$0xff] }
 0x601   : > { %1804 = vmatmul.mubr.msk.f32.vlgmr.msra.gmra.mxu0 %vm407_vm5, %v789_v19 }
 0x602   : > { %1818 = vmatpush3.msra.mxu0 %v2463_v20  ;;  %1825 = vmatprep.mubr.msk.f32.mxu0 %vm2235_vm6, %v2234_v21  ;;  %v878_v43 = vpop.permute.xlu1 %877 }
 0x603   : > { %1819 = vmatprep.subr.mxu0 %v2234_v21 }
 0x604   : > { %1820 = vmatpush3.msra.mxu0 %v2466_v22 }
 0x605   : > { %1821 = vmatprep.subr.mxu0 %v2234_v21 }
 0x606   : > { %1822 = vmatpush3.msra.mxu0 %v2472_v26 }
 0x607   : > { %1823 = vmatprep.subr.mxu0 %v2234_v21 }
 0x608   : > { %1824 = vmatpush3.msra.mxu0 %v2477_v28 }
 0x609   : > { %1839 = vmatprep.subr.mxu0 %v2234_v21 }
 0x6c1   : > { %v863_v33 = vpop.f32.mrf.mxu0 }
 0x6c2   : > { %v867_v34 = vadd.f32 %v863_v33, %v509_v32 }
 0x6c3   : > { %v1805_v35 = vpop.f32.mrf.mxu0 }
 0x6c4   : > { %1973 = vtanh.f32 %v867_v34  ;;  %v1677_v37 = vmul.f32 -1.442695, %v867_v34 }
 0x6c6   : > { %1975 = vpow2.f32 %v1677_v37 }
 0x6d1   : > { %v1974_v36 = vpop.eup %1973 }
 0x6d2   : > { %882 = vrot.lane.b32.xlu0 %v1974_v36, %s2236_s22 }
 0x6d3   : > { %v1976_v38 = vpop.eup %1975 }
 0x6d4   : > { %v871_v39 = vadd.f32 1.0, %v1976_v38 }
 0x6d6   : > { %1977 = vrcp.f32 %v871_v39 }
 0x6e3   : > { %v1978_v40 = vpop.eup %1977 }
 0x6e4   : > { %v880_v44 = vmul.f32 %v1978_v40, %v878_v43  ;;  %v524_v43 = vadd.f32 %v2570_v25, %v2509_v31 }
 0x744   : > { %v883_v41 = vpop.permute.xlu0 %882 }
 0x745   : > { %v885_v42 = vmul.f32 %v1978_v40, %v883_v41 }
 0x747   : > { %887 = vrot.lane.b32.xlu0 %v885_v42, %s2237_s20 }
 0x7b9   : > { %v888_v45 = vpop.permute.xlu0 %887 }
 0x7ba   : > { %v890_v46 = vadd.f32 %v888_v45, %v880_v44 }
 0x7bc   : > { %1979 = vtanh.f32 %v890_v46 }
 0x7c9   : > { %v1980_v47 = vpop.eup %1979 }
 0x7ca   : > { %893 = vrot.lane.b32.xlu1 %v1980_v47, %s2236_s22 }
 0x7ce   : > { %898 = vrot.lane.b32.xlu1 %v890_v46, %s2238_s10 }
 0x83c   : > { %v894_v48 = vpop.permute.xlu1 %893 }
 0x83d   : > { %v896_v49 = vmul.f32 %v1978_v40, %v894_v48 }
 0x83f   : > { %903 = vrot.lane.b32.xlu0 %v896_v49, %s2237_s20 }
 0x840   : > { %v899_v50 = vpop.permute.xlu1 %898 }
 0x841   : > { %901 = vst.msk [vmem:[#allocation3] sm:$0xff] %vm407_vm5, %v899_v50 }
 0x848   : > { %v997_v51 = vld [vmem:[#allocation3] sm:$0xff] }
 0x849   : > { %999 = vrot.lane.b32.xlu1 %v997_v51, %s2237_s20 }
 0x8b1   : > { %v904_v52 = vpop.permute.xlu0 %903 }
 0x8b2   : > { %906 = vst.msk [vmem:[#allocation2] sm:$0xff] %vm407_vm5, %v904_v52  ;;  %1678 = vst.msk [vmem:[%s2456_s9 + $0x10] sm:$0xff] %vm407_vm5, %v904_v52 }
 0x8b9   : > { %v911_v53 = vld [vmem:[#allocation2] sm:$0xff] }
 0x8ba   : > { %1815 = vmatmul.mubr.msk.f32.vlgmr.msra.gmra.mxu1 %vm407_vm5, %v911_v53 }
 0x8bb   : > { %1829 = vmatpush3.msra.mxu1 %v2463_v20  ;;  %1836 = vmatprep.mubr.msk.f32.mxu1 %vm2235_vm6, %v2234_v21  ;;  %v1000_v1 = vpop.permute.xlu1 %999 }
 0x8bc   : > { %1830 = vmatprep.subr.mxu1 %v2234_v21 }
 0x8bd   : > { %1831 = vmatpush3.msra.mxu1 %v2466_v22 }
 0x8be   : > { %1832 = vmatprep.subr.mxu1 %v2234_v21 }
 0x8bf   : > { %1833 = vmatpush3.msra.mxu1 %v2472_v26 }
 0x8c0   : > { %1834 = vmatprep.subr.mxu1 %v2234_v21 }
 0x8c1   : > { %1835 = vmatpush3.msra.mxu1 %v2477_v28 }
 0x8c2   : > { %1850 = vmatprep.subr.mxu1 %v2234_v21 }
 0x97a   : > { %v985_v55 = vpop.f32.mrf.mxu1 }
 0x97b   : > { %v989_v56 = vadd.f32 %v985_v55, %v514_v54 }
 0x97c   : > { %v1816_v57 = vpop.f32.mrf.mxu1 }
 0x97d   : > { %1981 = vtanh.f32 %v989_v56  ;;  %v1680_v59 = vmul.f32 -1.442695, %v989_v56 }
 0x97f   : > { %1983 = vpow2.f32 %v1680_v59  ;;  %v529_v59 = vadd.f32 %v2509_v31, %v2576_v30 }
 0x98a   : > { %v1982_v58 = vpop.eup %1981 }
 0x98b   : > { %1004 = vrot.lane.b32.xlu0 %v1982_v58, %s2236_s22 }
 0x98c   : > { %v1984_v60 = vpop.eup %1983 }
 0x98d   : > { %v993_v61 = vadd.f32 1.0, %v1984_v60 }
 0x98f   : > { %1985 = vrcp.f32 %v993_v61 }
 0x99c   : > { %v1986_v62 = vpop.eup %1985 }
 0x99d   : > { %v1002_v2 = vmul.f32 %v1986_v62, %v1000_v1 }
 0x9fd   : > { %v1005_v63 = vpop.permute.xlu0 %1004 }
 0x9fe   : > { %v1007_v0 = vmul.f32 %v1986_v62, %v1005_v63 }
 0xa00   : > { %1009 = vrot.lane.b32.xlu0 %v1007_v0, %s2237_s20 }
 0xa72   : > { %v1010_v3 = vpop.permute.xlu0 %1009 }
 0xa73   : > { %v1012_v4 = vadd.f32 %v1010_v3, %v1002_v2 }
 0xa75   : > { %1987 = vtanh.f32 %v1012_v4 }
 0xa82   : > { %v1988_v5 = vpop.eup %1987 }
 0xa83   : > { %1015 = vrot.lane.b32.xlu1 %v1988_v5, %s2236_s22 }
 0xa87   : > { %1020 = vrot.lane.b32.xlu1 %v1012_v4, %s2238_s10 }
 0xaf5   : > { %v1016_v6 = vpop.permute.xlu1 %1015 }
 0xaf6   : > { %v1018_v7 = vmul.f32 %v1986_v62, %v1016_v6 }
 0xaf8   : > { %1025 = vrot.lane.b32.xlu0 %v1018_v7, %s2237_s20 }
 0xaf9   : > { %v1021_v8 = vpop.permute.xlu1 %1020 }
 0xafa   : > { %1023 = vst.msk [vmem:[#allocation3] sm:$0xff] %vm407_vm5, %v1021_v8 }
 0xb01   : > { %v1119_v9 = vld [vmem:[#allocation3] sm:$0xff] }
 0xb02   : > { %1121 = vrot.lane.b32.xlu1 %v1119_v9, %s2237_s20 }
 0xb6a   : > { %v1026_v10 = vpop.permute.xlu0 %1025 }
 0xb6b   : > { %1028 = vst.msk [vmem:[#allocation2] sm:$0xff] %vm407_vm5, %v1026_v10  ;;  %1681 = vst.msk [vmem:[%s2456_s9 + $0x18] sm:$0xff] %vm407_vm5, %v1026_v10 }
 0xb72   : > { %v1033_v11 = vld [vmem:[#allocation2] sm:$0xff] }
 0xb73   : > { %1826 = vmatmul.mubr.msk.f32.vlgmr.msra.gmra.mxu0 %vm407_vm5, %v1033_v11 }
 0xb74   : > { %1840 = vmatpush3.msra.mxu0 %v2463_v20  ;;  %1847 = vmatprep.mubr.msk.f32.mxu0 %vm2235_vm6, %v2234_v21  ;;  %v1122_v33 = vpop.permute.xlu1 %1121 }
 0xb75   : > { %1841 = vmatprep.subr.mxu0 %v2234_v21 }
 0xb76   : > { %1842 = vmatpush3.msra.mxu0 %v2466_v22 }
 0xb77   : > { %1843 = vmatprep.subr.mxu0 %v2234_v21 }
 0xb78   : > { %1844 = vmatpush3.msra.mxu0 %v2472_v26 }
 0xb79   : > { %1845 = vmatprep.subr.mxu0 %v2234_v21 }
 0xb7a   : > { %1846 = vmatpush3.msra.mxu0 %v2477_v28 }
 0xc33   : > { %v1107_v13 = vpop.f32.mrf.mxu0 }
 0xc34   : > { %v1111_v14 = vadd.f32 %v1107_v13, %v519_v12 }
 0xc35   : > { %v1827_v15 = vpop.f32.mrf.mxu0 }
 0xc36   : > { %1989 = vtanh.f32 %v1111_v14  ;;  %v1683_v17 = vmul.f32 -1.442695, %v1111_v14 }
 0xc38   : > { %1991 = vpow2.f32 %v1683_v17 }
 0xc43   : > { %v1990_v16 = vpop.eup %1989 }
 0xc44   : > { %1126 = vrot.lane.b32.xlu0 %v1990_v16, %s2236_s22  ;;  %v534_v16 = vadd.f32 %v2574_v29, %v2509_v31 }
 0xc45   : > { %v1992_v18 = vpop.eup %1991 }
 0xc46   : > { %v1115_v19 = vadd.f32 1.0, %v1992_v18 }
 0xc48   : > { %1993 = vrcp.f32 %v1115_v19 }
 0xc55   : > { %v1994_v23 = vpop.eup %1993 }
 0xc56   : > { %v1124_v34 = vmul.f32 %v1994_v23, %v1122_v33 }
 0xcb6   : > { %v1127_v24 = vpop.permute.xlu0 %1126 }
 0xcb7   : > { %v1129_v32 = vmul.f32 %v1994_v23, %v1127_v24 }
 0xcb9   : > { %1131 = vrot.lane.b32.xlu0 %v1129_v32, %s2237_s20 }
 0xd2b   : > { %v1132_v27 = vpop.permute.xlu0 %1131 }
 0xd2c   : > { %v1134_v35 = vadd.f32 %v1132_v27, %v1124_v34 }
 0xd2e   : > { %1995 = vtanh.f32 %v1134_v35 }
 0xd3b   : > { %v1996_v36 = vpop.eup %1995 }
 0xd3c   : > { %1137 = vrot.lane.b32.xlu1 %v1996_v36, %s2236_s22 }
 0xd40   : > { %1142 = vrot.lane.b32.xlu1 %v1134_v35, %s2238_s10 }
 0xdae   : > { %v1138_v37 = vpop.permute.xlu1 %1137 }
 0xdaf   : > { %v1140_v38 = vmul.f32 %v1994_v23, %v1138_v37 }
 0xdb1   : > { %1147 = vrot.lane.b32.xlu0 %v1140_v38, %s2237_s20 }
 0xdb2   : > { %v1143_v39 = vpop.permute.xlu1 %1142 }
 0xdb3   : > { %1145 = vst.msk [vmem:[#allocation3] sm:$0xff] %vm407_vm5, %v1143_v39 }
 0xdba   : > { %v1241_v40 = vld [vmem:[#allocation3] sm:$0xff] }
 0xdbb   : > { %1243 = vrot.lane.b32.xlu1 %v1241_v40, %s2237_s20 }
 0xe23   : > { %v1148_v41 = vpop.permute.xlu0 %1147 }
 0xe24   : > { %1150 = vst.msk [vmem:[#allocation2] sm:$0xff] %vm407_vm5, %v1148_v41  ;;  %1684 = vst.msk [vmem:[%s2456_s9 + $0x20] sm:$0xff] %vm407_vm5, %v1148_v41 }
 0xe2b   : > { %v1155_v42 = vld [vmem:[#allocation2] sm:$0xff] }
 0xe2c   : > { %1837 = vmatmul.mubr.msk.f32.vlgmr.msra.gmra.mxu1 %vm407_vm5, %v1155_v42 }
 0xe2d   : > { %1851 = vmatpush3.msra.mxu1 %v2463_v20  ;;  %1858 = vmatprep.mubr.msk.f32.mxu1 %vm2235_vm6, %v2234_v21 }
 0xe2e   : > { %1852 = vmatprep.subr.mxu1 %v2234_v21 }
 0xe2f   : > { %1853 = vmatpush3.msra.mxu1 %v2466_v22 }
 0xe30   : > { %1854 = vmatprep.subr.mxu1 %v2234_v21 }
 0xe31   : > { %1855 = vmatpush3.msra.mxu1 %v2472_v26 }
 0xe32   : > { %1856 = vmatprep.subr.mxu1 %v2234_v21 }
 0xe33   : > { %1857 = vmatpush3.msra.mxu1 %v2477_v28  ;;  %v1244_v28 = vpop.permute.xlu1 %1243 }
 0xeec   : > { %v1229_v44 = vpop.f32.mrf.mxu1 }
 0xeed   : > { %v1233_v20 = vadd.f32 %v1229_v44, %v524_v43 }
 0xeee   : > { %v1838_v45 = vpop.f32.mrf.mxu1 }
 0xeef   : > { %1997 = vtanh.f32 %v1233_v20  ;;  %v1686_v47 = vmul.f32 -1.442695, %v1233_v20 }
 0xef1   : > { %1999 = vpow2.f32 %v1686_v47 }
 0xefc   : > { %v1998_v46 = vpop.eup %1997 }
 0xefd   : > { %1248 = vrot.lane.b32.xlu0 %v1998_v46, %s2236_s22 }
 0xefe   : > { %v2000_v22 = vpop.eup %1999 }
 0xeff   : > { %v1237_v48 = vadd.f32 1.0, %v2000_v22 }
 0xf01   : > { %2001 = vrcp.f32 %v1237_v48 }
 0xf0e   : > { %v2002_v26 = vpop.eup %2001 }
 0xf0f   : > { %v1246_v50 = vmul.f32 %v2002_v26, %v1244_v28 }
 0xf6f   : > { %v1249_v49 = vpop.permute.xlu0 %1248 }
 0xf70   : > { %v1251_v21 = vmul.f32 %v2002_v26, %v1249_v49 }
 0xf72   : > { %1253 = vrot.lane.b32.xlu0 %v1251_v21, %s2237_s20 }
 0xfe4   : > { %v1254_v25 = vpop.permute.xlu0 %1253 }
 0xfe5   : > { %v1256_v51 = vadd.f32 %v1254_v25, %v1246_v50 }
 0xfe7   : > { %2003 = vtanh.f32 %v1256_v51 }
 0xff4   : > { %v2004_v52 = vpop.eup %2003 }
 0xff5   : > { %1259 = vrot.lane.b32.xlu1 %v2004_v52, %s2236_s22 }
 0xff9   : > { %1264 = vrot.lane.b32.xlu1 %v1256_v51, %s2238_s10 }
0x1067   : > { %v1260_v53 = vpop.permute.xlu1 %1259 }
0x1068   : > { %v1262_v54 = vmul.f32 %v2002_v26, %v1260_v53 }
0x106a   : > { %1269 = vrot.lane.b32.xlu0 %v1262_v54, %s2237_s20 }
0x106b   : > { %v1265_v55 = vpop.permute.xlu1 %1264 }
0x106c   : > { %1267 = vst.msk [vmem:[#allocation3] sm:$0xff] %vm407_vm5, %v1265_v55 }
0x1073   : > { %v1363_v56 = vld [vmem:[#allocation3] sm:$0xff] }
0x1074   : > { %1365 = vrot.lane.b32.xlu1 %v1363_v56, %s2237_s20 }
0x10dc   : > { %v1270_v57 = vpop.permute.xlu0 %1269 }
0x10dd   : > { %1272 = vst.msk [vmem:[#allocation2] sm:$0xff] %vm407_vm5, %v1270_v57  ;;  %1687 = vst.msk [vmem:[%s2456_s9 + $0x28] sm:$0xff] %vm407_vm5, %v1270_v57 }
0x10e4   : > { %v1277_v58 = vld [vmem:[#allocation2] sm:$0xff] }
0x10e5   : > { %1848 = vmatmul.mubr.msk.f32.vlgmr.msra.gmra.mxu0 %vm407_vm5, %v1277_v58 }
0x10e6   : > { %v1366_v6 = vpop.permute.xlu1 %1365 }
0x11a5   : > { %v1351_v60 = vpop.f32.mrf.mxu0 }
0x11a6   : > { %v1355_v61 = vadd.f32 %v1351_v60, %v529_v59 }
0x11a7   : > { %v1849_v62 = vpop.f32.mrf.mxu0 }
0x11a8   : > { %2005 = vtanh.f32 %v1355_v61  ;;  %v1689_v0 = vmul.f32 -1.442695, %v1355_v61 }
0x11aa   : > { %2007 = vpow2.f32 %v1689_v0 }
0x11b5   : > { %v2006_v63 = vpop.eup %2005 }
0x11b6   : > { %1370 = vrot.lane.b32.xlu0 %v2006_v63, %s2236_s22 }
0x11b7   : > { %v2008_v1 = vpop.eup %2007 }
0x11b8   : > { %v1359_v2 = vadd.f32 1.0, %v2008_v1 }
0x11ba   : > { %2009 = vrcp.f32 %v1359_v2 }
0x11c7   : > { %v2010_v3 = vpop.eup %2009 }
0x11c8   : > { %v1368_v7 = vmul.f32 %v2010_v3, %v1366_v6 }
0x1228   : > { %v1371_v4 = vpop.permute.xlu0 %1370 }
0x1229   : > { %v1373_v5 = vmul.f32 %v2010_v3, %v1371_v4 }
0x122b   : > { %1375 = vrot.lane.b32.xlu0 %v1373_v5, %s2237_s20 }
0x129d   : > { %v1376_v30 = vpop.permute.xlu0 %1375 }
0x129e   : > { %v1378_v8 = vadd.f32 %v1376_v30, %v1368_v7 }
0x12a0   : > { %2011 = vtanh.f32 %v1378_v8 }
0x12ad   : > { %v2012_v9 = vpop.eup %2011 }
0x12ae   : > { %1381 = vrot.lane.b32.xlu1 %v2012_v9, %s2236_s22 }
0x12b2   : > { %1386 = vrot.lane.b32.xlu1 %v1378_v8, %s2238_s10 }
0x1320   : > { %v1382_v10 = vpop.permute.xlu1 %1381 }
0x1321   : > { %v1384_v11 = vmul.f32 %v2010_v3, %v1382_v10 }
0x1323   : > { %1391 = vrot.lane.b32.xlu0 %v1384_v11, %s2237_s20 }
0x1324   : > { %v1387_v12 = vpop.permute.xlu1 %1386 }
0x1325   : > { %1389 = vst.msk [vmem:[#allocation3] sm:$0xff] %vm407_vm5, %v1387_v12 }
0x132c   : > { %v1485_v13 = vld [vmem:[#allocation3] sm:$0xff] }
0x132d   : > { %1487 = vrot.lane.b32.xlu1 %v1485_v13, %s2237_s20 }
0x1395   : > { %v1392_v14 = vpop.permute.xlu0 %1391 }
0x1396   : > { %1394 = vst.msk [vmem:[#allocation2] sm:$0xff] %vm407_vm5, %v1392_v14  ;;  %1690 = vst.msk [vmem:[%s2456_s9 + $0x30] sm:$0xff] %vm407_vm5, %v1392_v14 }
0x139d   : > { %v1399_v15 = vld [vmem:[#allocation2] sm:$0xff] }
0x139e   : > { %1859 = vmatmul.mubr.msk.f32.vlgmr.msra.gmra.mxu1 %vm407_vm5, %v1399_v15 }
0x139f   : > { %v1488_v31 = vpop.permute.xlu1 %1487 }
0x145e   : > { %v1473_v17 = vpop.f32.mrf.mxu1 }
0x145f   : > { %v1477_v18 = vadd.f32 %v1473_v17, %v534_v16 }
0x1460   : > { %v1860_v19 = vpop.f32.mrf.mxu1 }
0x1461   : > { %2013 = vtanh.f32 %v1477_v18  ;;  %v1692_v24 = vmul.f32 -1.442695, %v1477_v18 }
0x1463   : > { %2015 = vpow2.f32 %v1692_v24 }
0x146e   : > { %v2014_v23 = vpop.eup %2013 }
0x146f   : > { %1492 = vrot.lane.b32.xlu0 %v2014_v23, %s2236_s22 }
0x1470   : > { %v2016_v32 = vpop.eup %2015 }
0x1471   : > { %v1481_v33 = vadd.f32 1.0, %v2016_v32 }
0x1473   : > { %2017 = vrcp.f32 %v1481_v33 }
0x1480   : > { %v2018_v34 = vpop.eup %2017 }
0x1481   : > { %v1490_v29 = vmul.f32 %v2018_v34, %v1488_v31 }
0x14e1   : > { %v1493_v27 = vpop.permute.xlu0 %1492 }
0x14e2   : > { %v1495_v35 = vmul.f32 %v2018_v34, %v1493_v27 }
0x14e4   : > { %1497 = vrot.lane.b32.xlu0 %v1495_v35, %s2237_s20 }
0x1556   : > { %v1498_v36 = vpop.permute.xlu0 %1497 }
0x1557   : > { %v1500_v37 = vadd.f32 %v1498_v36, %v1490_v29 }
0x1559   : > { %2019 = vtanh.f32 %v1500_v37 }
0x1566   : > { %v2020_v38 = vpop.eup %2019 }
0x1567   : > { %1503 = vrot.lane.b32.xlu1 %v2020_v38, %s2236_s22 }
0x156b   : > { %1508 = vrot.lane.b32.xlu1 %v1500_v37, %s2238_s10 }
0x15d9   : > { %v1504_v39 = vpop.permute.xlu1 %1503 }
0x15da   : > { %v1506_v40 = vmul.f32 %v2018_v34, %v1504_v39 }
0x15dc   : > { %1513 = vrot.lane.b32.xlu0 %v1506_v40, %s2237_s20 }
0x15dd   : > { %v1509_v41 = vpop.permute.xlu1 %1508 }
0x15de   : > { %1511 = vst.msk [vmem:[#allocation3] sm:$0xff] %vm407_vm5, %v1509_v41 }
0x164e   : > { %v1514_v42 = vpop.permute.xlu0 %1513 }
0x164f   : > { %1516 = vst.msk [vmem:[#allocation2] sm:$0xff] %vm407_vm5, %v1514_v42  ;;  %1693 = vst.msk [vmem:[%s2456_s9 + $0x38] sm:$0xff] %vm407_vm5, %v1514_v42 }
0x1650   : > { %2166 = shalt.err (!%p2163_p6)
}
0x1651   : > { %s2167_s9 = scalar_lea.hbm %s2682_s11, 1024  ;;  %s2171_s20 = scalar_lea.hbm %s2737_s7, 2048 }
0x1652   : > { %p2168_p4 = scmp.ne.s32.totalorder %s2682_s11, %s2167_s9  ;;  %p2172_p2 = scmp.lt.s32.totalorder %s2682_s11, %s2737_s7 }
0x1653   : > { %p2173_p11 = scmp.lt.s32.totalorder %s2171_s20, %s2167_s9 }
0x1654   : > { %p2169_p9 = pnand %p2168_p4, %p2761_p5 }
0x1655   : > { %p2174_p8 = por %p2173_p11, %p2172_p2 }
0x1656   : > { %p2170_p10 = pneg %p2169_p9 }
0x1658   : > { %p2175_p13 = pnand %p2174_p8, %p2170_p10 }
0x165a   : > { %2178 = shalt.err (!%p2175_p13)
}
0x165b   : > { %s2240_s14 = smov 128   ;;  %s2241_s1 = smov 8  }
0x165c   : > { %1879 = dma.vmem_to_hbm [thread:$0]  (%p2761_p5), %s2684_s18, 1024, %s2682_s11, %s1520_s15, %s2240_s14, %s2240_s14, %s2241_s1  }
0x165d PF: > { %s1548_s17 = sand.u32 1, %s2213_s24   ;;  %p2762_p1 = scmp.ne.s32.totalorder %s2746_s8, 0 }
0x165e   : > { %p2763_p0 = scmp.ge.s32.totalorder %s2225_s27, 2  ;;  %s1549_s28 = scalar_lea.sflag [#allocation8], %s1548_s17 }
0x1660   : > { %p1899_p3 = pnand %p2763_p0, %p2762_p1 }
0x1662   : > { %p1900_p12 = pneg %p1899_p3 }
0x1664   : > { %2208 = dma.done.wait (%p1900_p12), %s1549_s28, 1024  }
0x1665   : > { %2210 = vsyncadd (%p1900_p12), %s1549_s28, 4294966272  ;;  %p22_p7 = scmp.ge.s32.totalorder %s2380_s16, 4   ;;  %s2764_s24 = smov %s2217_s25 }
0x1666   : > { %s2765_s25 = smov %s2221_s26  ;;  %s2766_s26 = smov %s2396_s29 }
0x1667   : > { %s2767_s27 = smov %s2380_s16  ;;  %24 = sbr.rel (!%p22_p7) target bundleno = 9 (0x9), region = 127 }
0x166c   :  { %1554 = vsyncpa [#allocation7], 1 }
0x166d   :  { %1556 = vsyncpa [#allocation7 + $0x1], 1 }
0x166e   :  { %1557 = vsyncpa [#allocation10], 1 }
0x166f   :  { %1558 = vsyncpa [#allocation13], 1 }
0x1670   :  { %1559 = vsyncpa [#allocation8], 1 }
0x1671   :  { %1561 = vsyncpa [#allocation8 + $0x1], 1 }

</bundles_post_ra>
